<compile_context>
chip_gen: v7x
topology: tpu7x:2x2x1
jax: 0.10.0
libtpu: 0.0.40
codegen_flags: <defaults>
</compile_context>

<pallas_src>
import jax
import jax.numpy as jnp
from jax.experimental import pallas as pl
from jax.experimental.pallas import tpu as pltpu

EPS = 1e-5
LANES = 128
VMEM_LIMIT_BYTES = 48 * 1024 * 1024   # leaves headroom inside v7x's 64 MiB


# ----------------------------- Pallas kernels ------------------------------ #

def _gemm_stats_kernel(p_ref, w_ref, y_ref, s_ref, ss_ref):
    """y = p @ w (MXU, f32 acc) + accumulate per-channel sum / sum-of-squares.

    s_ref / ss_ref have grid-invariant block indices -> they stay resident in
    VMEM across the whole ("arbitrary") M grid and act as accumulators.
    Zero-padded rows contribute exactly 0 to both sums, so row padding is safe.
    """
    y = jnp.dot(p_ref[...], w_ref[...], preferred_element_type=jnp.float32)
    y_ref[...] = y

    @pl.when(pl.program_id(0) == 0)
    def _():
        s_ref[...] = jnp.zeros_like(s_ref)
        ss_ref[...] = jnp.zeros_like(ss_ref)

    s_ref[...] += jnp.sum(y, axis=0, keepdims=True)
    ss_ref[...] += jnp.sum(y * y, axis=0, keepdims=True)


def _gemm2_stats_kernel(p_ref, w_ref, q_ref, v_ref,
                        y_ref, z_ref, sy_ref, ssy_ref, sz_ref, ssz_ref):
    """Fused conv2 GEMM + shortcut 1x1 GEMM, with BN statistics for both."""
    y = jnp.dot(p_ref[...], w_ref[...], preferred_element_type=jnp.float32)
    z = jnp.dot(q_ref[...], v_ref[...], preferred_element_type=jnp.float32)
    y_ref[...] = y
    z_ref[...] = z

    @pl.when(pl.program_id(0) == 0)
    def _():
        sy_ref[...] = jnp.zeros_like(sy_ref)
        ssy_ref[...] = jnp.zeros_like(ssy_ref)
        sz_ref[...] = jnp.zeros_like(sz_ref)
        ssz_ref[...] = jnp.zeros_like(ssz_ref)

    sy_ref[...] += jnp.sum(y, axis=0, keepdims=True)
    ssy_ref[...] += jnp.sum(y * y, axis=0, keepdims=True)
    sz_ref[...] += jnp.sum(z, axis=0, keepdims=True)
    ssz_ref[...] += jnp.sum(z * z, axis=0, keepdims=True)


def _bn_affine(y, s, ss, g, b, inv_m):
    """Training-mode BN (biased variance) from accumulated sum / sum-of-sq."""
    mean = s * inv_m
    var = jnp.maximum(ss * inv_m - mean * mean, 0.0)
    scale = jax.lax.rsqrt(var + EPS) * g
    return y * scale + (b - mean * scale)


def _make_bn_act_kernel(m_true, relu, has_residual):
    inv_m = 1.0 / float(m_true)

    def kernel(y_ref, s_ref, ss_ref, g_ref, b_ref, *rest):
        *res, o_ref = rest
        y = _bn_affine(y_ref[...], s_ref[...], ss_ref[...],
                       g_ref[...], b_ref[...], inv_m)
        if has_residual:
            y = y + res[0][...].astype(jnp.float32)
        if relu:
            y = jnp.maximum(y, 0.0)
        o_ref[...] = y.astype(o_ref.dtype)

    return kernel


def _make_bn2_add_relu_kernel(m_true):
    inv_m = 1.0 / float(m_true)

    def kernel(y_ref, z_ref, sy_ref, ssy_ref, sz_ref, ssz_ref,
               gy_ref, by_ref, gz_ref, bz_ref, o_ref):
        a = _bn_affine(y_ref[...], sy_ref[...], ssy_ref[...],
                       gy_ref[...], by_ref[...], inv_m)
        c = _bn_affine(z_ref[...], sz_ref[...], ssz_ref[...],
                       gz_ref[...], bz_ref[...], inv_m)
        o_ref[...] = jnp.maximum(a + c, 0.0).astype(o_ref.dtype)

    return kernel


# --------------------------- pallas_call wrappers --------------------------- #

def _compiler_params(semantics):
    return pltpu.CompilerParams(dimension_semantics=semantics,
                                vmem_limit_bytes=VMEM_LIMIT_BYTES)


def _row_spec(tm, cols):
    return pl.BlockSpec((tm, cols), lambda i: (i, 0))


def _full_spec(rows, cols):
    # Grid-invariant block (weights, BN params, stats): DMA'd once, not per tile.
    return pl.BlockSpec((rows, cols), lambda i: (0, 0))


def _gemm_stats_call(p, w, tm):
    mp, kp = p.shape
    cp = w.shape[1]
    cost = pl.CostEstimate(
        flops=2 * mp * kp * cp, transcendentals=0,
        bytes_accessed=int(p.size * p.dtype.itemsize + w.size * w.dtype.itemsize
                           + mp * cp * 4 + 2 * cp * 4))
    return pl.pallas_call(
        _gemm_stats_kernel,
        grid=(mp // tm,),
        in_specs=[_row_spec(tm, kp), _full_spec(kp, cp)],
        out_specs=[_row_spec(tm, cp), _full_spec(1, cp), _full_spec(1, cp)],
        out_shape=[jax.ShapeDtypeStruct((mp, cp), jnp.float32),
                   jax.ShapeDtypeStruct((1, cp), jnp.float32),
                   jax.ShapeDtypeStruct((1, cp), jnp.float32)],
        compiler_params=_compiler_params(("arbitrary",)),
        cost_estimate=cost,
    )(p, w)


def _gemm2_stats_call(p, w, q, v, tm):
    mp, kp = p.shape
    cp = w.shape[1]
    kq = q.shape[1]
    cost = pl.CostEstimate(
        flops=2 * mp * (kp + kq) * cp, transcendentals=0,
        bytes_accessed=int(p.size * p.dtype.itemsize + w.size * w.dtype.itemsize
                           + q.size * q.dtype.itemsize + v.size * v.dtype.itemsize
                           + 2 * mp * cp * 4 + 4 * cp * 4))
    return pl.pallas_call(
        _gemm2_stats_kernel,
        grid=(mp // tm,),
        in_specs=[_row_spec(tm, kp), _full_spec(kp, cp),
                  _row_spec(tm, kq), _full_spec(kq, cp)],
        out_specs=[_row_spec(tm, cp), _row_spec(tm, cp),
                   _full_spec(1, cp), _full_spec(1, cp),
                   _full_spec(1, cp), _full_spec(1, cp)],
        out_shape=[jax.ShapeDtypeStruct((mp, cp), jnp.float32),
                   jax.ShapeDtypeStruct((mp, cp), jnp.float32)]
                  + [jax.ShapeDtypeStruct((1, cp), jnp.float32)] * 4,
        compiler_params=_compiler_params(("arbitrary",)),
        cost_estimate=cost,
    )(p, w, q, v)


def _bn_act_call(y, s, ss, g, b, *, m_true, relu, residual, out_dtype, tm):
    mp, cp = y.shape
    kern = _make_bn_act_kernel(m_true, relu, residual is not None)
    in_specs = [_row_spec(tm, cp), _full_spec(1, cp), _full_spec(1, cp),
                _full_spec(1, cp), _full_spec(1, cp)]
    args = [y, s, ss, g, b]
    if residual is not None:
        in_specs.append(_row_spec(tm, cp))
        args.append(residual)
    return pl.pallas_call(
        kern,
        grid=(mp // tm,),
        in_specs=in_specs,
        out_specs=_row_spec(tm, cp),
        out_shape=jax.ShapeDtypeStruct((mp, cp), out_dtype),
        compiler_params=_compiler_params(("parallel",)),
    )(*args)


def _bn2_add_relu_call(y, z, sy, ssy, sz, ssz, gy, by, gz, bz, *, m_true, tm):
    mp, cp = y.shape
    kern = _make_bn2_add_relu_kernel(m_true)
    vec = _full_spec(1, cp)
    return pl.pallas_call(
        kern,
        grid=(mp // tm,),
        in_specs=[_row_spec(tm, cp), _row_spec(tm, cp),
                  vec, vec, vec, vec, vec, vec, vec, vec],
        out_specs=_row_spec(tm, cp),
        out_shape=jax.ShapeDtypeStruct((mp, cp), jnp.float32),
        compiler_params=_compiler_params(("parallel",)),
    )(y, z, sy, ssy, sz, ssz, gy, by, gz, bz)


# ------------------------------ JAX glue ----------------------------------- #

def _round_up(x, m):
    return (x + m - 1) // m * m


def _pad2(a, rows, cols):
    r, c = a.shape
    return jnp.pad(a, ((0, rows - r), (0, cols - c)))


def _pad_vec(v, cp):
    v = jnp.asarray(v, jnp.float32).reshape(-1)
    return jnp.pad(v, (0, cp - v.shape[0])).reshape(1, cp)


def _im2col(x_nhwc, ksize, stride, pad):
    """Extract conv patches. Returns ((M, k*k*C), Ho, Wo)."""
    n, h, w, c = x_nhwc.shape
    xp = jnp.pad(x_nhwc, ((0, 0), (pad, pad), (pad, pad), (0, 0)))
    ho = (h + 2 * pad - ksize) // stride + 1
    wo = (w + 2 * pad - ksize) // stride + 1
    cols = []
    for kh in range(ksize):
        for kw in range(ksize):
            cols.append(xp[:, kh:kh + stride * ho:stride,
                           kw:kw + stride * wo:stride, :])
    patches = jnp.concatenate(cols, axis=-1)
    return patches.reshape(n * ho * wo, ksize * ksize * c), ho, wo


def _w_to_mat(w_oihw):
    """PyTorch conv weight (Cout, Cin, kh, kw) -> GEMM matrix (kh*kw*Cin, Cout)."""
    cout, cin, kh, kw = w_oihw.shape
    return jnp.transpose(w_oihw, (2, 3, 1, 0)).reshape(kh * kw * cin, cout)


def basic_block_forward(x_nchw, params, *, stride, tm=512):
    """Forward pass of the PyTorch BasicBlock (training-mode BatchNorm)."""
    n, cin, h, w = x_nchw.shape
    cout = params["w1"].shape[0]
    cp = _round_up(cout, LANES)                           # lane-dense channels
    x = jnp.transpose(x_nchw, (0, 2, 3, 1)).astype(jnp.float32)   # NCHW -> NHWC

    # ---------------- conv1 (3x3, stride) + bn1 + relu1 ---------------------
    p1, ho, wo = _im2col(x, 3, stride, 1)
    m = n * ho * wo
    tm_eff = min(tm, _round_up(m, 8))                     # row tile (mult of 8)
    mp = _round_up(m, tm_eff)

    k1p = _round_up(p1.shape[1], LANES)
    p1p = _pad2(p1, mp, k1p).astype(jnp.bfloat16)         # bf16 -> MXU native
    w1m = _pad2(_w_to_mat(params["w1"]), k1p, cp).astype(jnp.bfloat16)
    g1, b1 = _pad_vec(params["g1"], cp), _pad_vec(params["b1"], cp)

    y1_raw, s1, ss1 = _gemm_stats_call(p1p, w1m, tm_eff)
    y1 = _bn_act_call(y1_raw, s1, ss1, g1, b1, m_true=m, relu=True,
                      residual=None, out_dtype=jnp.bfloat16, tm=tm_eff)

    # --------- conv2 (3x3, s=1) + bn2 [+ shortcut conv+bn] + add + relu2 ----
    y1_nhwc = y1[:m, :cout].reshape(n, ho, wo, cout)      # bf16 inter-stage
    p2, _, _ = _im2col(y1_nhwc, 3, 1, 1)
    k2p = _round_up(p2.shape[1], LANES)
    p2p = _pad2(p2, mp, k2p)
    w2m = _pad2(_w_to_mat(params["w2"]), k2p, cp).astype(jnp.bfloat16)
    g2, b2 = _pad_vec(params["g2"], cp), _pad_vec(params["b2"], cp)

    if stride != 1 or cin != cout:
        # Projection shortcut: 1x1 conv + BN fused into the conv2 passes.
        xs = x[:, ::stride, ::stride, :].reshape(m, cin)
        ksp = _round_up(cin, LANES)
        xsp = _pad2(xs, mp, ksp).astype(jnp.bfloat16)
        wsm = _pad2(_w_to_mat(params["ws"]), ksp, cp).astype(jnp.bfloat16)
        gs, bs = _pad_vec(params["gs"], cp), _pad_vec(params["bs"], cp)

        y2, sc, s2, ss2, s_s, ss_s = _gemm2_stats_call(p2p, w2m, xsp, wsm, tm_eff)
        out = _bn2_add_relu_call(y2, sc, s2, ss2, s_s, ss_s,
                                 g2, b2, gs, bs, m_true=m, tm=tm_eff)
    else:
        # Identity shortcut: add the original input.
        res = _pad2(x.reshape(m, cin), mp, cp)
        y2, s2, ss2 = _gemm_stats_call(p2p, w2m, tm_eff)
        out = _bn_act_call(y2, s2, ss2, g2, b2, m_true=m, relu=True,
                           residual=res, out_dtype=jnp.float32, tm=tm_eff)

    out = out[:m, :cout].reshape(n, ho, wo, cout)
    return jnp.transpose(out, (0, 3, 1, 2)).astype(jnp.float32)   # back to NCHW


# -------------------------- pure-JAX reference ------------------------------ #

def _ref_conv(x, w, stride, pad):
    return jax.lax.conv_general_dilated(
        x, w, window_strides=(stride, stride),
        padding=((pad, pad), (pad, pad)),
        dimension_numbers=("NCHW", "OIHW", "NCHW"))


def _ref_bn(y, g, b):
    mean = jnp.mean(y, axis=(0, 2, 3), keepdims=True)
    var = jnp.mean((y - mean) ** 2, axis=(0, 2, 3), keepdims=True)
    return ((y - mean) / jnp.sqrt(var + EPS)) * g.reshape(1, -1, 1, 1) \
        + b.reshape(1, -1, 1, 1)


def basic_block_reference(x, params, stride):
    cout = params["w1"].shape[0]
    t = jax.nn.relu(_ref_bn(_ref_conv(x, params["w1"], stride, 1),
                            params["g1"], params["b1"]))
    t = _ref_bn(_ref_conv(t, params["w2"], 1, 1), params["g2"], params["b2"])
    if stride != 1 or x.shape[1] != cout:
        sc = _ref_bn(_ref_conv(x, params["ws"], stride, 0),
                     params["gs"], params["bs"])
    else:
        sc = x
    return jax.nn.relu(t + sc)


def _make_params(key, cin, cout, projection):
    k1, k2, k3, k4, k5, k6, k7 = jax.random.split(key, 7)
    params = {
        "w1": jax.random.normal(k1, (cout, cin, 3, 3), jnp.float32) * 0.1,
        "g1": 1.0 + 0.1 * jax.random.normal(k4, (cout,), jnp.float32),
        "b1": 0.1 * jax.random.normal(k5, (cout,), jnp.float32),
        "w2": jax.random.normal(k2, (cout, cout, 3, 3), jnp.float32) * 0.1,
        "g2": 1.0 + 0.1 * jax.random.normal(k6, (cout,), jnp.float32),
        "b2": 0.1 * jax.random.normal(k7, (cout,), jnp.float32),
    }
    if projection:
        params.update({
            "ws": jax.random.normal(k3, (cout, cin, 1, 1), jnp.float32) * 0.1,
            "gs": jnp.ones((cout,), jnp.float32),
            "bs": jnp.zeros((cout,), jnp.float32),
        })
    return params


# --------------------------------- main ------------------------------------ #

if __name__ == "__main__":
    fwd = jax.jit(basic_block_forward, static_argnames=("stride", "tm"))
    # Tolerances reflect bf16 MXU inputs vs. the all-f32 reference (outputs are
    # O(1) after BatchNorm, so 5e-2 absolute ~= several bf16 epsilons stacked).
    ATOL = RTOL = 5e-2

    # Case 1: projection shortcut (stride 2, channel change). tm=48 gives a
    # 3-step grid with padded rows, exercising cross-tile BN stat accumulation.
    key = jax.random.PRNGKey(0)
    kp, kx = jax.random.split(key)
    n, cin, cout, h, w, stride = 2, 4, 8, 16, 16, 2
    params = _make_params(kp, cin, cout, projection=True)
    x = jax.random.normal(kx, (n, cin, h, w), jnp.float32)

    out = jax.block_until_ready(fwd(x, params, stride=stride, tm=48))
    ref = jax.block_until_ready(basic_block_reference(x, params, stride))
    assert out.shape == (n, cout, h // stride, w // stride), out.shape
    assert jnp.allclose(out, ref, atol=ATOL, rtol=RTOL), \
        float(jnp.max(jnp.abs(out - ref)))
    assert float(jnp.mean(jnp.abs(out - ref))) < 2e-2

    # Case 2: identity shortcut (stride 1, same channels), 2-step grid.
    kp2, kx2 = jax.random.split(jax.random.PRNGKey(1))
    n2, c2, h2, w2 = 2, 8, 8, 8
    params2 = _make_params(kp2, c2, c2, projection=False)
    x2 = jax.random.normal(kx2, (n2, c2, h2, w2), jnp.float32)

    out2 = jax.block_until_ready(fwd(x2, params2, stride=1, tm=64))
    ref2 = jax.block_until_ready(basic_block_reference(x2, params2, 1))
    assert out2.shape == (n2, c2, h2, w2), out2.shape
    assert jnp.allclose(out2, ref2, atol=ATOL, rtol=RTOL), \
        float(jnp.max(jnp.abs(out2 - ref2)))
    assert float(jnp.mean(jnp.abs(out2 - ref2))) < 2e-2

    print("KERNEL_OK")
</pallas_src>

<mosaic_0001>
module attributes {stable_mosaic.version = 11 : i64} {
  func.func @_gemm_stats_kernel(%arg0: i32, %arg1: memref<48x128xbf16, #tpu.memory_space<vmem>>, %arg2: memref<128x128xbf16, #tpu.memory_space<vmem>>, %arg3: memref<48x128xf32, #tpu.memory_space<vmem>>, %arg4: memref<1x128xf32, #tpu.memory_space<vmem>>, %arg5: memref<1x128xf32, #tpu.memory_space<vmem>>) attributes {dimension_semantics = [#tpu.dimension_semantics<arbitrary>], iteration_bounds = array<i64: 3>, scalar_prefetch = 0 : i64, scratch_operands = 0 : i64, tpu.core_type = #tpu.core_type<tc>, window_params = [{transform_indices = @transform_0, window_bounds = array<i64: 48, 128>}, {pipeline_mode = #tpu.pipeline_mode<synchronous>, transform_indices = @transform_1, window_bounds = array<i64: 128, 128>}, {transform_indices = @transform_2, window_bounds = array<i64: 48, 128>}, {pipeline_mode = #tpu.pipeline_mode<synchronous>, transform_indices = @transform_3, window_bounds = array<i64: 1, 128>}, {pipeline_mode = #tpu.pipeline_mode<synchronous>, transform_indices = @transform_4, window_bounds = array<i64: 1, 128>}]} {
    %c0 = arith.constant 0 : index
    %c0_0 = arith.constant 0 : index
    %0 = vector.load %arg1[%c0, %c0_0] : memref<48x128xbf16, #tpu.memory_space<vmem>>, vector<48x128xbf16>
    %c0_1 = arith.constant 0 : index
    %c0_2 = arith.constant 0 : index
    %1 = vector.load %arg2[%c0_1, %c0_2] : memref<128x128xbf16, #tpu.memory_space<vmem>>, vector<128x128xbf16>
    %cst = arith.constant dense<0.000000e+00> : vector<48x128xf32>
    %2 = tpu.matmul %0, %1, %cst {dimension_numbers = #tpu.dot_dimension_numbers<[1], [0], [0], [1], [0, 0, 1, 1], [], []>} : vector<48x128xbf16>, vector<128x128xbf16>, vector<48x128xf32> -> vector<48x128xf32>
    %c0_3 = arith.constant 0 : index
    %c0_4 = arith.constant 0 : index
    %3 = vector.load %arg3[%c0_3, %c0_4] : memref<48x128xf32, #tpu.memory_space<vmem>>, vector<48x128xf32>
    tpu.vector_store %arg3[%c0_3, %c0_4], %2 {strides = array<i32>} : memref<48x128xf32, #tpu.memory_space<vmem>>, vector<48x128xf32>,
    %c0_i32 = arith.constant 0 : i32
    %4 = arith.cmpi eq, %arg0, %c0_i32 : i32
    %5 = arith.extui %4 : i1 to i32
    %c0_i32_5 = arith.constant 0 : i32
    %6 = arith.cmpi ne, %5, %c0_i32_5 : i32
    scf.if %6 {
      %cst_16 = arith.constant 0.000000e+00 : f32
      %18 = vector.broadcast %cst_16 : f32 to vector<1x128xf32>
      %c0_17 = arith.constant 0 : index
      %c0_18 = arith.constant 0 : index
      %19 = vector.load %arg4[%c0_17, %c0_18] : memref<1x128xf32, #tpu.memory_space<vmem>>, vector<1x128xf32>
      tpu.vector_store %arg4[%c0_17, %c0_18], %18 {strides = array<i32>} : memref<1x128xf32, #tpu.memory_space<vmem>>, vector<1x128xf32>,
      %cst_19 = arith.constant 0.000000e+00 : f32
      %20 = vector.broadcast %cst_19 : f32 to vector<1x128xf32>
      %c0_20 = arith.constant 0 : index
      %c0_21 = arith.constant 0 : index
      %21 = vector.load %arg5[%c0_20, %c0_21] : memref<1x128xf32, #tpu.memory_space<vmem>>, vector<1x128xf32>
      tpu.vector_store %arg5[%c0_20, %c0_21], %20 {strides = array<i32>} : memref<1x128xf32, #tpu.memory_space<vmem>>, vector<1x128xf32>,
    } else {
    }
    %c0_6 = arith.constant 0 : index
    %c0_7 = arith.constant 0 : index
    %7 = vector.load %arg4[%c0_6, %c0_7] : memref<1x128xf32, #tpu.memory_space<vmem>>, vector<1x128xf32>
    %cst_8 = arith.constant dense<0.000000e+00> : vector<128xf32>
    %8 = vector.multi_reduction <add>, %2, %cst_8 [0] : vector<48x128xf32> to vector<128xf32>
    %9 = vector.shape_cast %8 : vector<128xf32> to vector<1x128xf32>
    %10 = arith.addf %7, %9 : vector<1x128xf32>
    %c0_9 = arith.constant 0 : index
    %c0_10 = arith.constant 0 : index
    %11 = vector.load %arg4[%c0_9, %c0_10] : memref<1x128xf32, #tpu.memory_space<vmem>>, vector<1x128xf32>
    tpu.vector_store %arg4[%c0_9, %c0_10], %10 {strides = array<i32>} : memref<1x128xf32, #tpu.memory_space<vmem>>, vector<1x128xf32>,
    %c0_11 = arith.constant 0 : index
    %c0_12 = arith.constant 0 : index
    %12 = vector.load %arg5[%c0_11, %c0_12] : memref<1x128xf32, #tpu.memory_space<vmem>>, vector<1x128xf32>
    %13 = arith.mulf %2, %2 : vector<48x128xf32>
    %cst_13 = arith.constant dense<0.000000e+00> : vector<128xf32>
    %14 = vector.multi_reduction <add>, %13, %cst_13 [0] : vector<48x128xf32> to vector<128xf32>
    %15 = vector.shape_cast %14 : vector<128xf32> to vector<1x128xf32>
    %16 = arith.addf %12, %15 : vector<1x128xf32>
    %c0_14 = arith.constant 0 : index
    %c0_15 = arith.constant 0 : index
    %17 = vector.load %arg5[%c0_14, %c0_15] : memref<1x128xf32, #tpu.memory_space<vmem>>, vector<1x128xf32>
    tpu.vector_store %arg5[%c0_14, %c0_15], %16 {strides = array<i32>} : memref<1x128xf32, #tpu.memory_space<vmem>>, vector<1x128xf32>,
    return
  }
  func.func @transform_0(%arg0: i32) -> (i32, i32) {
    %c0_i32 = arith.constant 0 : i32
    %c0_i32_0 = arith.constant 0 : i32
    return %arg0, %c0_i32 : i32, i32
  }
  func.func @transform_1(%arg0: i32) -> (i32, i32) {
    %c0_i32 = arith.constant 0 : i32
    %c0_i32_0 = arith.constant 0 : i32
    %c0_i32_1 = arith.constant 0 : i32
    return %c0_i32, %c0_i32_0 : i32, i32
  }
  func.func @transform_2(%arg0: i32) -> (i32, i32) {
    %c0_i32 = arith.constant 0 : i32
    %c0_i32_0 = arith.constant 0 : i32
    return %arg0, %c0_i32 : i32, i32
  }
  func.func @transform_3(%arg0: i32) -> (i32, i32) {
    %c0_i32 = arith.constant 0 : i32
    %c0_i32_0 = arith.constant 0 : i32
    %c0_i32_1 = arith.constant 0 : i32
    return %c0_i32, %c0_i32_0 : i32, i32
  }
  func.func @transform_4(%arg0: i32) -> (i32, i32) {
    %c0_i32 = arith.constant 0 : i32
    %c0_i32_0 = arith.constant 0 : i32
    %c0_i32_1 = arith.constant 0 : i32
    return %c0_i32, %c0_i32_0 : i32, i32
  }
}

module attributes {stable_mosaic.version = 11 : i64} {
  func.func @kernel(%arg0: i32, %arg1: memref<48x128xf32, #tpu.memory_space<vmem>>, %arg2: memref<1x128xf32, #tpu.memory_space<vmem>>, %arg3: memref<1x128xf32, #tpu.memory_space<vmem>>, %arg4: memref<1x128xf32, #tpu.memory_space<vmem>>, %arg5: memref<1x128xf32, #tpu.memory_space<vmem>>, %arg6: memref<48x128xbf16, #tpu.memory_space<vmem>>) attributes {dimension_semantics = [#tpu.dimension_semantics<parallel>], iteration_bounds = array<i64: 3>, scalar_prefetch = 0 : i64, scratch_operands = 0 : i64, tpu.core_type = #tpu.core_type<tc>, window_params = [{transform_indices = @transform_0, window_bounds = array<i64: 48, 128>}, {pipeline_mode = #tpu.pipeline_mode<synchronous>, transform_indices = @transform_1, window_bounds = array<i64: 1, 128>}, {pipeline_mode = #tpu.pipeline_mode<synchronous>, transform_indices = @transform_2, window_bounds = array<i64: 1, 128>}, {pipeline_mode = #tpu.pipeline_mode<synchronous>, transform_indices = @transform_3, window_bounds = array<i64: 1, 128>}, {pipeline_mode = #tpu.pipeline_mode<synchronous>, transform_indices = @transform_4, window_bounds = array<i64: 1, 128>}, {transform_indices = @transform_5, window_bounds = array<i64: 48, 128>}]} {
    %c0 = arith.constant 0 : index
    %c0_0 = arith.constant 0 : index
    %0 = vector.load %arg1[%c0, %c0_0] : memref<48x128xf32, #tpu.memory_space<vmem>>, vector<48x128xf32>
    %c0_1 = arith.constant 0 : index
    %c0_2 = arith.constant 0 : index
    %1 = vector.load %arg2[%c0_1, %c0_2] : memref<1x128xf32, #tpu.memory_space<vmem>>, vector<1x128xf32>
    %c0_3 = arith.constant 0 : index
    %c0_4 = arith.constant 0 : index
    %2 = vector.load %arg3[%c0_3, %c0_4] : memref<1x128xf32, #tpu.memory_space<vmem>>, vector<1x128xf32>
    %c0_5 = arith.constant 0 : index
    %c0_6 = arith.constant 0 : index
    %3 = vector.load %arg4[%c0_5, %c0_6] : memref<1x128xf32, #tpu.memory_space<vmem>>, vector<1x128xf32>
    %c0_7 = arith.constant 0 : index
    %c0_8 = arith.constant 0 : index
    %4 = vector.load %arg5[%c0_7, %c0_8] : memref<1x128xf32, #tpu.memory_space<vmem>>, vector<1x128xf32>
    %cst = arith.constant 7.812500e-03 : f32
    %5 = vector.broadcast %cst : f32 to vector<1x128xf32>
    %6 = arith.mulf %1, %5 : vector<1x128xf32>
    %cst_9 = arith.constant 7.812500e-03 : f32
    %7 = vector.broadcast %cst_9 : f32 to vector<1x128xf32>
    %8 = arith.mulf %2, %7 : vector<1x128xf32>
    %9 = arith.mulf %6, %6 : vector<1x128xf32>
    %10 = arith.subf %8, %9 : vector<1x128xf32>
    %cst_10 = arith.constant 0.000000e+00 : f32
    %11 = vector.broadcast %cst_10 : f32 to vector<1x128xf32>
    %12 = arith.maximumf %10, %11 : vector<1x128xf32>
    %cst_11 = arith.constant 9.99999974E-6 : f32
    %13 = vector.broadcast %cst_11 : f32 to vector<1x128xf32>
    %14 = arith.addf %12, %13 : vector<1x128xf32>
    %15 = math.rsqrt %14 : vector<1x128xf32>
    %16 = arith.mulf %15, %3 : vector<1x128xf32>
    %17 = vector.broadcast %16 : vector<1x128xf32> to vector<48x128xf32>
    %18 = arith.mulf %0, %17 : vector<48x128xf32>
    %19 = arith.mulf %6, %16 : vector<1x128xf32>
    %20 = arith.subf %4, %19 : vector<1x128xf32>
    %21 = vector.broadcast %20 : vector<1x128xf32> to vector<48x128xf32>
    %22 = arith.addf %18, %21 : vector<48x128xf32>
    %cst_12 = arith.constant 0.000000e+00 : f32
    %23 = vector.broadcast %cst_12 : f32 to vector<48x128xf32>
    %24 = arith.maximumf %22, %23 : vector<48x128xf32>
    %25 = arith.truncf %24 : vector<48x128xf32> to vector<48x128xbf16>
    %c0_13 = arith.constant 0 : index
    %c0_14 = arith.constant 0 : index
    %26 = vector.load %arg6[%c0_13, %c0_14] : memref<48x128xbf16, #tpu.memory_space<vmem>>, vector<48x128xbf16>
    tpu.vector_store %arg6[%c0_13, %c0_14], %25 {strides = array<i32>} : memref<48x128xbf16, #tpu.memory_space<vmem>>, vector<48x128xbf16>,
    return
  }
  func.func @transform_0(%arg0: i32) -> (i32, i32) {
    %c0_i32 = arith.constant 0 : i32
    %c0_i32_0 = arith.constant 0 : i32
    return %arg0, %c0_i32 : i32, i32
  }
  func.func @transform_1(%arg0: i32) -> (i32, i32) {
    %c0_i32 = arith.constant 0 : i32
    %c0_i32_0 = arith.constant 0 : i32
    %c0_i32_1 = arith.constant 0 : i32
    return %c0_i32, %c0_i32_0 : i32, i32
  }
  func.func @transform_2(%arg0: i32) -> (i32, i32) {
    %c0_i32 = arith.constant 0 : i32
    %c0_i32_0 = arith.constant 0 : i32
    %c0_i32_1 = arith.constant 0 : i32
    return %c0_i32, %c0_i32_0 : i32, i32
  }
  func.func @transform_3(%arg0: i32) -> (i32, i32) {
    %c0_i32 = arith.constant 0 : i32
    %c0_i32_0 = arith.constant 0 : i32
    %c0_i32_1 = arith.constant 0 : i32
    return %c0_i32, %c0_i32_0 : i32, i32
  }
  func.func @transform_4(%arg0: i32) -> (i32, i32) {
    %c0_i32 = arith.constant 0 : i32
    %c0_i32_0 = arith.constant 0 : i32
    %c0_i32_1 = arith.constant 0 : i32
    return %c0_i32, %c0_i32_0 : i32, i32
  }
  func.func @transform_5(%arg0: i32) -> (i32, i32) {
    %c0_i32 = arith.constant 0 : i32
    %c0_i32_0 = arith.constant 0 : i32
    return %arg0, %c0_i32 : i32, i32
  }
}

module attributes {stable_mosaic.version = 11 : i64} {
  func.func @_gemm2_stats_kernel(%arg0: i32, %arg1: memref<48x128xbf16, #tpu.memory_space<vmem>>, %arg2: memref<128x128xbf16, #tpu.memory_space<vmem>>, %arg3: memref<48x128xbf16, #tpu.memory_space<vmem>>, %arg4: memref<128x128xbf16, #tpu.memory_space<vmem>>, %arg5: memref<48x128xf32, #tpu.memory_space<vmem>>, %arg6: memref<48x128xf32, #tpu.memory_space<vmem>>, %arg7: memref<1x128xf32, #tpu.memory_space<vmem>>, %arg8: memref<1x128xf32, #tpu.memory_space<vmem>>, %arg9: memref<1x128xf32, #tpu.memory_space<vmem>>, %arg10: memref<1x128xf32, #tpu.memory_space<vmem>>) attributes {dimension_semantics = [#tpu.dimension_semantics<arbitrary>], iteration_bounds = array<i64: 3>, scalar_prefetch = 0 : i64, scratch_operands = 0 : i64, tpu.core_type = #tpu.core_type<tc>, window_params = [{transform_indices = @transform_0, window_bounds = array<i64: 48, 128>}, {pipeline_mode = #tpu.pipeline_mode<synchronous>, transform_indices = @transform_1, window_bounds = array<i64: 128, 128>}, {transform_indices = @transform_2, window_bounds = array<i64: 48, 128>}, {pipeline_mode = #tpu.pipeline_mode<synchronous>, transform_indices = @transform_3, window_bounds = array<i64: 128, 128>}, {transform_indices = @transform_4, window_bounds = array<i64: 48, 128>}, {transform_indices = @transform_5, window_bounds = array<i64: 48, 128>}, {pipeline_mode = #tpu.pipeline_mode<synchronous>, transform_indices = @transform_6, window_bounds = array<i64: 1, 128>}, {pipeline_mode = #tpu.pipeline_mode<synchronous>, transform_indices = @transform_7, window_bounds = array<i64: 1, 128>}, {pipeline_mode = #tpu.pipeline_mode<synchronous>, transform_indices = @transform_8, window_bounds = array<i64: 1, 128>}, {pipeline_mode = #tpu.pipeline_mode<synchronous>, transform_indices = @transform_9, window_bounds = array<i64: 1, 128>}]} {
    %c0 = arith.constant 0 : index
    %c0_0 = arith.constant 0 : index
    %0 = vector.load %arg1[%c0, %c0_0] : memref<48x128xbf16, #tpu.memory_space<vmem>>, vector<48x128xbf16>
    %c0_1 = arith.constant 0 : index
    %c0_2 = arith.constant 0 : index
    %1 = vector.load %arg2[%c0_1, %c0_2] : memref<128x128xbf16, #tpu.memory_space<vmem>>, vector<128x128xbf16>
    %cst = arith.constant dense<0.000000e+00> : vector<48x128xf32>
    %2 = tpu.matmul %0, %1, %cst {dimension_numbers = #tpu.dot_dimension_numbers<[1], [0], [0], [1], [0, 0, 1, 1], [], []>} : vector<48x128xbf16>, vector<128x128xbf16>, vector<48x128xf32> -> vector<48x128xf32>
    %c0_3 = arith.constant 0 : index
    %c0_4 = arith.constant 0 : index
    %3 = vector.load %arg3[%c0_3, %c0_4] : memref<48x128xbf16, #tpu.memory_space<vmem>>, vector<48x128xbf16>
    %c0_5 = arith.constant 0 : index
    %c0_6 = arith.constant 0 : index
    %4 = vector.load %arg4[%c0_5, %c0_6] : memref<128x128xbf16, #tpu.memory_space<vmem>>, vector<128x128xbf16>
    %cst_7 = arith.constant dense<0.000000e+00> : vector<48x128xf32>
    %5 = tpu.matmul %3, %4, %cst_7 {dimension_numbers = #tpu.dot_dimension_numbers<[1], [0], [0], [1], [0, 0, 1, 1], [], []>} : vector<48x128xbf16>, vector<128x128xbf16>, vector<48x128xf32> -> vector<48x128xf32>
    %c0_8 = arith.constant 0 : index
    %c0_9 = arith.constant 0 : index
    %6 = vector.load %arg5[%c0_8, %c0_9] : memref<48x128xf32, #tpu.memory_space<vmem>>, vector<48x128xf32>
    tpu.vector_store %arg5[%c0_8, %c0_9], %2 {strides = array<i32>} : memref<48x128xf32, #tpu.memory_space<vmem>>, vector<48x128xf32>,
    %c0_10 = arith.constant 0 : index
    %c0_11 = arith.constant 0 : index
    %7 = vector.load %arg6[%c0_10, %c0_11] : memref<48x128xf32, #tpu.memory_space<vmem>>, vector<48x128xf32>
    tpu.vector_store %arg6[%c0_10, %c0_11], %5 {strides = array<i32>} : memref<48x128xf32, #tpu.memory_space<vmem>>, vector<48x128xf32>,
    %c0_i32 = arith.constant 0 : i32
    %8 = arith.cmpi eq, %arg0, %c0_i32 : i32
    %9 = arith.extui %8 : i1 to i32
    %c0_i32_12 = arith.constant 0 : i32
    %10 = arith.cmpi ne, %9, %c0_i32_12 : i32
    scf.if %10 {
      %cst_33 = arith.constant 0.000000e+00 : f32
      %33 = vector.broadcast %cst_33 : f32 to vector<1x128xf32>
      %c0_34 = arith.constant 0 : index
      %c0_35 = arith.constant 0 : index
      %34 = vector.load %arg7[%c0_34, %c0_35] : memref<1x128xf32, #tpu.memory_space<vmem>>, vector<1x128xf32>
      tpu.vector_store %arg7[%c0_34, %c0_35], %33 {strides = array<i32>} : memref<1x128xf32, #tpu.memory_space<vmem>>, vector<1x128xf32>,
      %cst_36 = arith.constant 0.000000e+00 : f32
      %35 = vector.broadcast %cst_36 : f32 to vector<1x128xf32>
      %c0_37 = arith.constant 0 : index
      %c0_38 = arith.constant 0 : index
      %36 = vector.load %arg8[%c0_37, %c0_38] : memref<1x128xf32, #tpu.memory_space<vmem>>, vector<1x128xf32>
      tpu.vector_store %arg8[%c0_37, %c0_38], %35 {strides = array<i32>} : memref<1x128xf32, #tpu.memory_space<vmem>>, vector<1x128xf32>,
      %cst_39 = arith.constant 0.000000e+00 : f32
      %37 = vector.broadcast %cst_39 : f32 to vector<1x128xf32>
      %c0_40 = arith.constant 0 : index
      %c0_41 = arith.constant 0 : index
      %38 = vector.load %arg9[%c0_40, %c0_41] : memref<1x128xf32, #tpu.memory_space<vmem>>, vector<1x128xf32>
      tpu.vector_store %arg9[%c0_40, %c0_41], %37 {strides = array<i32>} : memref<1x128xf32, #tpu.memory_space<vmem>>, vector<1x128xf32>,
      %cst_42 = arith.constant 0.000000e+00 : f32
      %39 = vector.broadcast %cst_42 : f32 to vector<1x128xf32>
      %c0_43 = arith.constant 0 : index
      %c0_44 = arith.constant 0 : index
      %40 = vector.load %arg10[%c0_43, %c0_44] : memref<1x128xf32, #tpu.memory_space<vmem>>, vector<1x128xf32>
      tpu.vector_store %arg10[%c0_43, %c0_44], %39 {strides = array<i32>} : memref<1x128xf32, #tpu.memory_space<vmem>>, vector<1x128xf32>,
    } else {
    }
    %c0_13 = arith.constant 0 : index
    %c0_14 = arith.constant 0 : index
    %11 = vector.load %arg7[%c0_13, %c0_14] : memref<1x128xf32, #tpu.memory_space<vmem>>, vector<1x128xf32>
    %cst_15 = arith.constant dense<0.000000e+00> : vector<128xf32>
    %12 = vector.multi_reduction <add>, %2, %cst_15 [0] : vector<48x128xf32> to vector<128xf32>
    %13 = vector.shape_cast %12 : vector<128xf32> to vector<1x128xf32>
    %14 = arith.addf %11, %13 : vector<1x128xf32>
    %c0_16 = arith.constant 0 : index
    %c0_17 = arith.constant 0 : index
    %15 = vector.load %arg7[%c0_16, %c0_17] : memref<1x128xf32, #tpu.memory_space<vmem>>, vector<1x128xf32>
    tpu.vector_store %arg7[%c0_16, %c0_17], %14 {strides = array<i32>} : memref<1x128xf32, #tpu.memory_space<vmem>>, vector<1x128xf32>,
    %c0_18 = arith.constant 0 : index
    %c0_19 = arith.constant 0 : index
    %16 = vector.load %arg8[%c0_18, %c0_19] : memref<1x128xf32, #tpu.memory_space<vmem>>, vector<1x128xf32>
    %17 = arith.mulf %2, %2 : vector<48x128xf32>
    %cst_20 = arith.constant dense<0.000000e+00> : vector<128xf32>
    %18 = vector.multi_reduction <add>, %17, %cst_20 [0] : vector<48x128xf32> to vector<128xf32>
    %19 = vector.shape_cast %18 : vector<128xf32> to vector<1x128xf32>
    %20 = arith.addf %16, %19 : vector<1x128xf32>
    %c0_21 = arith.constant 0 : index
    %c0_22 = arith.constant 0 : index
    %21 = vector.load %arg8[%c0_21, %c0_22] : memref<1x128xf32, #tpu.memory_space<vmem>>, vector<1x128xf32>
    tpu.vector_store %arg8[%c0_21, %c0_22], %20 {strides = array<i32>} : memref<1x128xf32, #tpu.memory_space<vmem>>, vector<1x128xf32>,
    %c0_23 = arith.constant 0 : index
    %c0_24 = arith.constant 0 : index
    %22 = vector.load %arg9[%c0_23, %c0_24] : memref<1x128xf32, #tpu.memory_space<vmem>>, vector<1x128xf32>
    %cst_25 = arith.constant dense<0.000000e+00> : vector<128xf32>
    %23 = vector.multi_reduction <add>, %5, %cst_25 [0] : vector<48x128xf32> to vector<128xf32>
    %24 = vector.shape_cast %23 : vector<128xf32> to vector<1x128xf32>
    %25 = arith.addf %22, %24 : vector<1x128xf32>
    %c0_26 = arith.constant 0 : index
    %c0_27 = arith.constant 0 : index
    %26 = vector.load %arg9[%c0_26, %c0_27] : memref<1x128xf32, #tpu.memory_space<vmem>>, vector<1x128xf32>
    tpu.vector_store %arg9[%c0_26, %c0_27], %25 {strides = array<i32>} : memref<1x128xf32, #tpu.memory_space<vmem>>, vector<1x128xf32>,
    %c0_28 = arith.constant 0 : index
    %c0_29 = arith.constant 0 : index
    %27 = vector.load %arg10[%c0_28, %c0_29] : memref<1x128xf32, #tpu.memory_space<vmem>>, vector<1x128xf32>
    %28 = arith.mulf %5, %5 : vector<48x128xf32>
    %cst_30 = arith.constant dense<0.000000e+00> : vector<128xf32>
    %29 = vector.multi_reduction <add>, %28, %cst_30 [0] : vector<48x128xf32> to vector<128xf32>
    %30 = vector.shape_cast %29 : vector<128xf32> to vector<1x128xf32>
    %31 = arith.addf %27, %30 : vector<1x128xf32>
    %c0_31 = arith.constant 0 : index
    %c0_32 = arith.constant 0 : index
    %32 = vector.load %arg10[%c0_31, %c0_32] : memref<1x128xf32, #tpu.memory_space<vmem>>, vector<1x128xf32>
    tpu.vector_store %arg10[%c0_31, %c0_32], %31 {strides = array<i32>} : memref<1x128xf32, #tpu.memory_space<vmem>>, vector<1x128xf32>,
    return
  }
  func.func @transform_0(%arg0: i32) -> (i32, i32) {
    %c0_i32 = arith.constant 0 : i32
    %c0_i32_0 = arith.constant 0 : i32
    return %arg0, %c0_i32 : i32, i32
  }
  func.func @transform_1(%arg0: i32) -> (i32, i32) {
    %c0_i32 = arith.constant 0 : i32
    %c0_i32_0 = arith.constant 0 : i32
    %c0_i32_1 = arith.constant 0 : i32
    return %c0_i32, %c0_i32_0 : i32, i32
  }
  func.func @transform_2(%arg0: i32) -> (i32, i32) {
    %c0_i32 = arith.constant 0 : i32
    %c0_i32_0 = arith.constant 0 : i32
    return %arg0, %c0_i32 : i32, i32
  }
  func.func @transform_3(%arg0: i32) -> (i32, i32) {
    %c0_i32 = arith.constant 0 : i32
    %c0_i32_0 = arith.constant 0 : i32
    %c0_i32_1 = arith.constant 0 : i32
    return %c0_i32, %c0_i32_0 : i32, i32
  }
  func.func @transform_4(%arg0: i32) -> (i32, i32) {
    %c0_i32 = arith.constant 0 : i32
    %c0_i32_0 = arith.constant 0 : i32
    return %arg0, %c0_i32 : i32, i32
  }
  func.func @transform_5(%arg0: i32) -> (i32, i32) {
    %c0_i32 = arith.constant 0 : i32
    %c0_i32_0 = arith.constant 0 : i32
    return %arg0, %c0_i32 : i32, i32
  }
  func.func @transform_6(%arg0: i32) -> (i32, i32) {
    %c0_i32 = arith.constant 0 : i32
    %c0_i32_0 = arith.constant 0 : i32
    %c0_i32_1 = arith.constant 0 : i32
    return %c0_i32, %c0_i32_0 : i32, i32
  }
  func.func @transform_7(%arg0: i32) -> (i32, i32) {
    %c0_i32 = arith.constant 0 : i32
    %c0_i32_0 = arith.constant 0 : i32
    %c0_i32_1 = arith.constant 0 : i32
    return %c0_i32, %c0_i32_0 : i32, i32
  }
  func.func @transform_8(%arg0: i32) -> (i32, i32) {
    %c0_i32 = arith.constant 0 : i32
    %c0_i32_0 = arith.constant 0 : i32
    %c0_i32_1 = arith.constant 0 : i32
    return %c0_i32, %c0_i32_0 : i32, i32
  }
  func.func @transform_9(%arg0: i32) -> (i32, i32) {
    %c0_i32 = arith.constant 0 : i32
    %c0_i32_0 = arith.constant 0 : i32
    %c0_i32_1 = arith.constant 0 : i32
    return %c0_i32, %c0_i32_0 : i32, i32
  }
}

module attributes {stable_mosaic.version = 11 : i64} {
  func.func @kernel(%arg0: i32, %arg1: memref<48x128xf32, #tpu.memory_space<vmem>>, %arg2: memref<48x128xf32, #tpu.memory_space<vmem>>, %arg3: memref<1x128xf32, #tpu.memory_space<vmem>>, %arg4: memref<1x128xf32, #tpu.memory_space<vmem>>, %arg5: memref<1x128xf32, #tpu.memory_space<vmem>>, %arg6: memref<1x128xf32, #tpu.memory_space<vmem>>, %arg7: memref<1x128xf32, #tpu.memory_space<vmem>>, %arg8: memref<1x128xf32, #tpu.memory_space<vmem>>, %arg9: memref<1x128xf32, #tpu.memory_space<vmem>>, %arg10: memref<1x128xf32, #tpu.memory_space<vmem>>, %arg11: memref<48x128xf32, #tpu.memory_space<vmem>>) attributes {dimension_semantics = [#tpu.dimension_semantics<parallel>], iteration_bounds = array<i64: 3>, scalar_prefetch = 0 : i64, scratch_operands = 0 : i64, tpu.core_type = #tpu.core_type<tc>, window_params = [{transform_indices = @transform_0, window_bounds = array<i64: 48, 128>}, {transform_indices = @transform_1, window_bounds = array<i64: 48, 128>}, {pipeline_mode = #tpu.pipeline_mode<synchronous>, transform_indices = @transform_2, window_bounds = array<i64: 1, 128>}, {pipeline_mode = #tpu.pipeline_mode<synchronous>, transform_indices = @transform_3, window_bounds = array<i64: 1, 128>}, {pipeline_mode = #tpu.pipeline_mode<synchronous>, transform_indices = @transform_4, window_bounds = array<i64: 1, 128>}, {pipeline_mode = #tpu.pipeline_mode<synchronous>, transform_indices = @transform_5, window_bounds = array<i64: 1, 128>}, {pipeline_mode = #tpu.pipeline_mode<synchronous>, transform_indices = @transform_6, window_bounds = array<i64: 1, 128>}, {pipeline_mode = #tpu.pipeline_mode<synchronous>, transform_indices = @transform_7, window_bounds = array<i64: 1, 128>}, {pipeline_mode = #tpu.pipeline_mode<synchronous>, transform_indices = @transform_8, window_bounds = array<i64: 1, 128>}, {pipeline_mode = #tpu.pipeline_mode<synchronous>, transform_indices = @transform_9, window_bounds = array<i64: 1, 128>}, {transform_indices = @transform_10, window_bounds = array<i64: 48, 128>}]} {
    %c0 = arith.constant 0 : index
    %c0_0 = arith.constant 0 : index
    %0 = vector.load %arg1[%c0, %c0_0] : memref<48x128xf32, #tpu.memory_space<vmem>>, vector<48x128xf32>
    %c0_1 = arith.constant 0 : index
    %c0_2 = arith.constant 0 : index
    %1 = vector.load %arg3[%c0_1, %c0_2] : memref<1x128xf32, #tpu.memory_space<vmem>>, vector<1x128xf32>
    %c0_3 = arith.constant 0 : index
    %c0_4 = arith.constant 0 : index
    %2 = vector.load %arg4[%c0_3, %c0_4] : memref<1x128xf32, #tpu.memory_space<vmem>>, vector<1x128xf32>
    %c0_5 = arith.constant 0 : index
    %c0_6 = arith.constant 0 : index
    %3 = vector.load %arg7[%c0_5, %c0_6] : memref<1x128xf32, #tpu.memory_space<vmem>>, vector<1x128xf32>
    %c0_7 = arith.constant 0 : index
    %c0_8 = arith.constant 0 : index
    %4 = vector.load %arg8[%c0_7, %c0_8] : memref<1x128xf32, #tpu.memory_space<vmem>>, vector<1x128xf32>
    %cst = arith.constant 7.812500e-03 : f32
    %5 = vector.broadcast %cst : f32 to vector<1x128xf32>
    %6 = arith.mulf %1, %5 : vector<1x128xf32>
    %cst_9 = arith.constant 7.812500e-03 : f32
    %7 = vector.broadcast %cst_9 : f32 to vector<1x128xf32>
    %8 = arith.mulf %2, %7 : vector<1x128xf32>
    %9 = arith.mulf %6, %6 : vector<1x128xf32>
    %10 = arith.subf %8, %9 : vector<1x128xf32>
    %cst_10 = arith.constant 0.000000e+00 : f32
    %11 = vector.broadcast %cst_10 : f32 to vector<1x128xf32>
    %12 = arith.maximumf %10, %11 : vector<1x128xf32>
    %cst_11 = arith.constant 9.99999974E-6 : f32
    %13 = vector.broadcast %cst_11 : f32 to vector<1x128xf32>
    %14 = arith.addf %12, %13 : vector<1x128xf32>
    %15 = math.rsqrt %14 : vector<1x128xf32>
    %16 = arith.mulf %15, %3 : vector<1x128xf32>
    %17 = vector.broadcast %16 : vector<1x128xf32> to vector<48x128xf32>
    %18 = arith.mulf %0, %17 : vector<48x128xf32>
    %19 = arith.mulf %6, %16 : vector<1x128xf32>
    %20 = arith.subf %4, %19 : vector<1x128xf32>
    %21 = vector.broadcast %20 : vector<1x128xf32> to vector<48x128xf32>
    %22 = arith.addf %18, %21 : vector<48x128xf32>
    %c0_12 = arith.constant 0 : index
    %c0_13 = arith.constant 0 : index
    %23 = vector.load %arg2[%c0_12, %c0_13] : memref<48x128xf32, #tpu.memory_space<vmem>>, vector<48x128xf32>
    %c0_14 = arith.constant 0 : index
    %c0_15 = arith.constant 0 : index
    %24 = vector.load %arg5[%c0_14, %c0_15] : memref<1x128xf32, #tpu.memory_space<vmem>>, vector<1x128xf32>
    %c0_16 = arith.constant 0 : index
    %c0_17 = arith.constant 0 : index
    %25 = vector.load %arg6[%c0_16, %c0_17] : memref<1x128xf32, #tpu.memory_space<vmem>>, vector<1x128xf32>
    %c0_18 = arith.constant 0 : index
    %c0_19 = arith.constant 0 : index
    %26 = vector.load %arg9[%c0_18, %c0_19] : memref<1x128xf32, #tpu.memory_space<vmem>>, vector<1x128xf32>
    %c0_20 = arith.constant 0 : index
    %c0_21 = arith.constant 0 : index
    %27 = vector.load %arg10[%c0_20, %c0_21] : memref<1x128xf32, #tpu.memory_space<vmem>>, vector<1x128xf32>
    %cst_22 = arith.constant 7.812500e-03 : f32
    %28 = vector.broadcast %cst_22 : f32 to vector<1x128xf32>
    %29 = arith.mulf %24, %28 : vector<1x128xf32>
    %cst_23 = arith.constant 7.812500e-03 : f32
    %30 = vector.broadcast %cst_23 : f32 to vector<1x128xf32>
    %31 = arith.mulf %25, %30 : vector<1x128xf32>
    %32 = arith.mulf %29, %29 : vector<1x128xf32>
    %33 = arith.subf %31, %32 : vector<1x128xf32>
    %cst_24 = arith.constant 0.000000e+00 : f32
    %34 = vector.broadcast %cst_24 : f32 to vector<1x128xf32>
    %35 = arith.maximumf %33, %34 : vector<1x128xf32>
    %cst_25 = arith.constant 9.99999974E-6 : f32
    %36 = vector.broadcast %cst_25 : f32 to vector<1x128xf32>
    %37 = arith.addf %35, %36 : vector<1x128xf32>
    %38 = math.rsqrt %37 : vector<1x128xf32>
    %39 = arith.mulf %38, %26 : vector<1x128xf32>
    %40 = vector.broadcast %39 : vector<1x128xf32> to vector<48x128xf32>
    %41 = arith.mulf %23, %40 : vector<48x128xf32>
    %42 = arith.mulf %29, %39 : vector<1x128xf32>
    %43 = arith.subf %27, %42 : vector<1x128xf32>
    %44 = vector.broadcast %43 : vector<1x128xf32> to vector<48x128xf32>
    %45 = arith.addf %41, %44 : vector<48x128xf32>
    %46 = arith.addf %22, %45 : vector<48x128xf32>
    %cst_26 = arith.constant 0.000000e+00 : f32
    %47 = vector.broadcast %cst_26 : f32 to vector<48x128xf32>
    %48 = arith.maximumf %46, %47 : vector<48x128xf32>
    %c0_27 = arith.constant 0 : index
    %c0_28 = arith.constant 0 : index
    %49 = vector.load %arg11[%c0_27, %c0_28] : memref<48x128xf32, #tpu.memory_space<vmem>>, vector<48x128xf32>
    tpu.vector_store %arg11[%c0_27, %c0_28], %48 {strides = array<i32>} : memref<48x128xf32, #tpu.memory_space<vmem>>, vector<48x128xf32>,
    return
  }
  func.func @transform_0(%arg0: i32) -> (i32, i32) {
    %c0_i32 = arith.constant 0 : i32
    %c0_i32_0 = arith.constant 0 : i32
    return %arg0, %c0_i32 : i32, i32
  }
  func.func @transform_1(%arg0: i32) -> (i32, i32) {
    %c0_i32 = arith.constant 0 : i32
    %c0_i32_0 = arith.constant 0 : i32
    return %arg0, %c0_i32 : i32, i32
  }
  func.func @transform_2(%arg0: i32) -> (i32, i32) {
    %c0_i32 = arith.constant 0 : i32
    %c0_i32_0 = arith.constant 0 : i32
    %c0_i32_1 = arith.constant 0 : i32
    return %c0_i32, %c0_i32_0 : i32, i32
  }
  func.func @transform_3(%arg0: i32) -> (i32, i32) {
    %c0_i32 = arith.constant 0 : i32
    %c0_i32_0 = arith.constant 0 : i32
    %c0_i32_1 = arith.constant 0 : i32
    return %c0_i32, %c0_i32_0 : i32, i32
  }
  func.func @transform_4(%arg0: i32) -> (i32, i32) {
    %c0_i32 = arith.constant 0 : i32
    %c0_i32_0 = arith.constant 0 : i32
    %c0_i32_1 = arith.constant 0 : i32
    return %c0_i32, %c0_i32_0 : i32, i32
  }
  func.func @transform_5(%arg0: i32) -> (i32, i32) {
    %c0_i32 = arith.constant 0 : i32
    %c0_i32_0 = arith.constant 0 : i32
    %c0_i32_1 = arith.constant 0 : i32
    return %c0_i32, %c0_i32_0 : i32, i32
  }
  func.func @transform_6(%arg0: i32) -> (i32, i32) {
    %c0_i32 = arith.constant 0 : i32
    %c0_i32_0 = arith.constant 0 : i32
    %c0_i32_1 = arith.constant 0 : i32
    return %c0_i32, %c0_i32_0 : i32, i32
  }
  func.func @transform_7(%arg0: i32) -> (i32, i32) {
    %c0_i32 = arith.constant 0 : i32
    %c0_i32_0 = arith.constant 0 : i32
    %c0_i32_1 = arith.constant 0 : i32
    return %c0_i32, %c0_i32_0 : i32, i32
  }
  func.func @transform_8(%arg0: i32) -> (i32, i32) {
    %c0_i32 = arith.constant 0 : i32
    %c0_i32_0 = arith.constant 0 : i32
    %c0_i32_1 = arith.constant 0 : i32
    return %c0_i32, %c0_i32_0 : i32, i32
  }
  func.func @transform_9(%arg0: i32) -> (i32, i32) {
    %c0_i32 = arith.constant 0 : i32
    %c0_i32_0 = arith.constant 0 : i32
    %c0_i32_1 = arith.constant 0 : i32
    return %c0_i32, %c0_i32_0 : i32, i32
  }
  func.func @transform_10(%arg0: i32) -> (i32, i32) {
    %c0_i32 = arith.constant 0 : i32
    %c0_i32_0 = arith.constant 0 : i32
    return %arg0, %c0_i32 : i32, i32
  }
}

</mosaic_0001>

<bundles_post_ra>
// kernel: basic_block_forward.5
= control target key start
LH: loop header
LB: loop body
LE: loop exit
PB: predicated region body
PF: predicated region fallthrough
CT: control target
= control target key end

     0   :  { %s450_s18 = smov 0   ;;  %s483_s0 = inlined_call_operand.vmem [shape: f32[144,128], index: 0, kind: input, shape index: {}]   ;;  %s484_s1 = inlined_call_operand.vmem [shape: f32[1,128], index: 1, kind: input, shape index: {}]   ;;  %s485_s2 = inlined_call_operand.vmem [shape: f32[1,128], index: 2, kind: input, shape index: {}]   ;;  %s486_s3 = inlined_call_operand.vmem [shape: f32[1,128], index: 3, kind: input, shape index: {}]   ;;  %s487_s4 = inlined_call_operand.vmem [shape: f32[1,128], index: 4, kind: input, shape index: {}]   ;;  %s488_s5 = inlined_call_operand.vmem [shape: bf16[144,128], index: 5, kind: output, shape index: {}]  }
   0x1 LB: > { %s364_s19 = sadd.s32 4294967295, %s418_s18   ;;  %p368_p0 = scmp.ge.s32.totalorder %s418_s18, 1  ;;  %s418_s18 = sphi %s450_s18, %s15_s18  }
   0x2   : > { %p188_p1 = scmp.lt.s32.totalorder %s418_s18, 4 }
   0x4   : > { %p189_p2 = pnand %p368_p0, %p188_p1 }
   0x5   : > { %v234_v0 = vld [vmem:[%s484_s1] sm:$0x1] (!%p189_p2)  ;;  %s216_s24 = smul.u32 (!%p189_p2), 6, %s364_s19  ;;  %v247_v8 = vlaneseq (!%p189_p2) }
   0x6   : > { %192 = sbr.rel (%p189_p2) target bundleno = 43 (0x2b), region = 40  ;;  %v235_v1 = vld [vmem:[%s485_s2] sm:$0x1] (!%p189_p2)  ;;  %v238_v2 = vmul.f32 (!%p189_p2), 0.0078125, %v234_v0 }
   0x7   : > { %v239_v3 = vmul.f32 (!%p189_p2), 0.0078125, %v235_v1  ;;  %p217_p3 = scmp.lt.s32.totalorder (!%p189_p2), %s216_s24, 17  ;;  %v248_v9 = vshrl.u32 (!%p189_p2), %v247_v8, 7  ;;  %v236_v10 = vld [vmem:[%s486_s3] sm:$0x1] (!%p189_p2) }
   0x8   : > { %v240_v4 = vmul.f32 (!%p189_p2), %v238_v2, %v238_v2  ;;  %v237_v13 = vld [vmem:[%s487_s4] sm:$0x1] (!%p189_p2) }
   0x9   : > { %v249_v11 = vsub.s32 (!%p189_p2), 0, %v248_v9 }
   0xa   : > { %v241_v5 = vsub.f32 (!%p189_p2), %v239_v3, %v240_v4 }
   0xc   : > { %v242_v6 = vmax.f32 (!%p189_p2), %v241_v5, 0.0 }
   0xd   : > { %s490_s24 = smov (!%p217_p3, %s216_s24), 17 }
   0xe   : > { %v243_v7 = vadd.f32 1e-05, %v242_v6  ;;  %s369_s25 = sshll.u32 %s490_s24, 3  ;;  %s370_s8 = sshll.u32 %s490_s24, 2 }
   0xf   : > { %s220_s30 = scalar_lea.vmem %s483_s0, %s369_s25  ;;  %s226_s11 = scalar_lea.vmem %s488_s5, %s370_s8 }
  0x10   : > { %410 = vrsqrt.f32 %v243_v7  ;;  %v228_v15 = vld [vmem:[%s220_s30] sm:$0xff]  ;;  %v229_v16 = vld [vmem:[%s220_s30 + $0x8] sm:$0xff]  ;;  %v230_v17 = vld [vmem:[%s220_s30 + $0x10] sm:$0xff] }
  0x11   : > { %v231_v20 = vld [vmem:[%s220_s30 + $0x18] sm:$0xff]  ;;  %v232_v21 = vld [vmem:[%s220_s30 + $0x20] sm:$0xff]  ;;  %v233_v22 = vld [vmem:[%s220_s30 + $0x28] sm:$0xff] }
  0x1a   : > { %v411_v12 = vpop.eup %410 }
  0x1b   : > { %v245_v14 = vmul.f32 %v411_v12, %v236_v10 }
  0x1d   : > { %v250_v18 = vrot.slane %v245_v14, %v249_v11  ;;  %v258_v19 = vmul.f32 %v245_v14, %v238_v2 }
  0x1f   : > { %v252_v23 = vmul.f32 %v250_v18, %v228_v15  ;;  %v253_v24 = vmul.f32 %v250_v18, %v229_v16  ;;  %v259_v25 = vsub.f32 %v237_v13, %v258_v19  ;;  %v254_v26 = vmul.f32 %v250_v18, %v230_v17 }
  0x20   : > { %v255_v27 = vmul.f32 %v250_v18, %v231_v20  ;;  %v256_v28 = vmul.f32 %v250_v18, %v232_v21  ;;  %v257_v29 = vmul.f32 %v250_v18, %v233_v22 }
  0x21   : > { %v264_v30 = vrot.slane %v259_v25, %v249_v11 }
  0x23   : > { %v266_v31 = vadd.f32 %v264_v30, %v252_v23  ;;  %v267_v32 = vadd.f32 %v264_v30, %v253_v24  ;;  %v268_v33 = vadd.f32 %v264_v30, %v254_v26  ;;  %v269_v34 = vadd.f32 %v264_v30, %v255_v27 }
  0x24   : > { %v270_v35 = vadd.f32 %v264_v30, %v256_v28  ;;  %v271_v36 = vadd.f32 %v264_v30, %v257_v29 }
  0x25   : > { %v272_v37 = vmax.f32 %v266_v31, 0.0  ;;  %v273_v38 = vmax.f32 %v267_v32, 0.0  ;;  %v274_v39 = vmax.f32 %v268_v33, 0.0  ;;  %v275_v40 = vmax.f32 %v269_v34, 0.0 }
  0x26   : > { %v276_v41 = vmax.f32 %v270_v35, 0.0  ;;  %v277_v42 = vmax.f32 %v271_v36, 0.0 }
  0x27   : > { %v388_v43 = vpack.c.bf16 %v273_v38, %v272_v37  ;;  %v393_v44 = vpack.c.bf16 %v275_v40, %v274_v39 }
  0x28   : > { %v398_v45 = vpack.c.bf16 %v277_v42, %v276_v41 }
  0x29   : > { %389 = vst [vmem:[%s226_s11] sm:$0xff] %v388_v43   ;;  %400 = vst [vmem:[%s226_s11 + $0x8] sm:$0xff] %v393_v44  }
  0x2a   : > { %401 = vst [vmem:[%s226_s11 + $0x10] sm:$0xff] %v398_v45  }
  0x2b PF: > { %s15_s18 = sadd.s32 1, %s418_s18  }
  0x2c   : > { %p12_p4 = scmp.ge.s32.totalorder %s15_s18, 5  }
  0x2e   :  { %14 = sbr.rel (!%p12_p4) target bundleno = 1 (0x1), region = 70 }

// kernel: basic_block_forward.4
= control target key start
LH: loop header
LB: loop body
LE: loop exit
PB: predicated region body
PF: predicated region fallthrough
CT: control target
= control target key end

     0   :  { %s590_s15 = smov 0   ;;  %s665_s0 = inlined_call_operand.vmem [shape: bf16[144,128], index: 0, kind: input, shape index: {}]   ;;  %s666_s1 = inlined_call_operand.vmem [shape: bf16[128,128], index: 1, kind: input, shape index: {}]   ;;  %s667_s2 = inlined_call_operand.vmem [shape: f32[144,128], index: 2, kind: output, shape index: {0}]   ;;  %s668_s3 = inlined_call_operand.vmem [shape: f32[1,128], index: 3, kind: output, shape index: {1}]   ;;  %s669_s4 = inlined_call_operand.vmem [shape: f32[1,128], index: 4, kind: output, shape index: {2}]  }
   0x1 LB: > { %s456_s16 = sadd.s32 4294967295, %s560_s15   ;;  %p460_p0 = scmp.ge.s32.totalorder %s560_s15, 1  ;;  %s560_s15 = sphi %s590_s15, %s15_s15  }
   0x2   : > { %p158_p1 = scmp.lt.s32.totalorder %s560_s15, 4 }
   0x4   : > { %p159_p2 = pnand %p460_p0, %p158_p1 }
   0x5   : > { %v543_v0 = vld [vmem:[%s666_s1] sm:$0xff] (!%p159_p2)   ;;  %v562_v1 = vmov (!%p159_p2), 0.0   ;;  %v544_v2 = vld [vmem:[%s666_s1 + $0x8] sm:$0xff] (!%p159_p2)   ;;  %s184_s21 = smul.u32 (!%p159_p2), 6, %s456_s16  ;;  %vm563_vm0 = vmmov (!%p159_p2), 0   ;;  %v545_v3 = vld [vmem:[%s666_s1 + $0x10] sm:$0xff] (!%p159_p2)  }
   0x6   : > { %162 = sbr.rel (%p159_p2) target bundleno = 288 (0x120), region = 28  ;;  %516 = vmatprep.subr.bf16.mxu1 (!%p159_p2), %v562_v1  ;;  %488 = vmatprep.subr.bf16.mxu0 (!%p159_p2), %v562_v1  ;;  %v546_v4 = vld [vmem:[%s666_s1 + $0x18] sm:$0xff] (!%p159_p2)   ;;  %v547_v5 = vld [vmem:[%s666_s1 + $0x20] sm:$0xff] (!%p159_p2)   ;;  %v548_v6 = vld [vmem:[%s666_s1 + $0x28] sm:$0xff] (!%p159_p2)   ;;  %p474_p4 = scmp.ne.s32.totalorder (!%p159_p2), %s456_s16, 0 }
   0x7   : > { %524 = vmatpush3.bf16.msra.mxu1 (!%p159_p2), %v543_v0  ;;  %489 = vmatpush3.bf16.msra.mxu0 (!%p159_p2), %v543_v0  ;;  %p185_p3 = scmp.lt.s32.totalorder (!%p159_p2), %s184_s21, 17  ;;  %v549_v7 = vld [vmem:[%s666_s1 + $0x30] sm:$0xff] (!%p159_p2)   ;;  %v550_v8 = vld [vmem:[%s666_s1 + $0x38] sm:$0xff] (!%p159_p2)  }
   0x8   : > { %517 = vmatprep.subr.bf16.mxu1 (!%p159_p2), %v562_v1  ;;  %490 = vmatprep.subr.bf16.mxu0 (!%p159_p2), %v562_v1 }
   0x9   : > { %508 = vmatprep.mubr.msk.bf16.mxu1 (!%p159_p2), %vm563_vm0, %v562_v1  ;;  %504 = vmatprep.mubr.msk.bf16.mxu0 (!%p159_p2), %vm563_vm0, %v562_v1 }
   0xb   : > { %525 = vmatpush3.bf16.msra.mxu1 (!%p159_p2), %v544_v2  ;;  %491 = vmatpush3.bf16.msra.mxu0 (!%p159_p2), %v544_v2 }
   0xc   : > { %518 = vmatprep.subr.bf16.mxu1 (!%p159_p2), %v562_v1  ;;  %492 = vmatprep.subr.bf16.mxu0 (!%p159_p2), %v562_v1 }
   0xd   : > { %s671_s21 = smov (!%p185_p3, %s184_s21), 17  ;;  %v564_v24 = vmov (!%p474_p4), 0.0  }
   0xe   : > { %s461_s24 = sshll.u32 %s671_s21, 2  ;;  %s462_s12 = sshll.u32 %s671_s21, 3  ;;  %352 = vst [vmem:[%s668_s3] sm:$0x1] (!%p474_p4), %v564_v24  ;;  %353 = vst [vmem:[%s669_s4] sm:$0x1] (!%p474_p4), %v564_v24 }
   0xf   : > { %s617_s27 = scalar_lea.vmem %s665_s0, %s461_s24  ;;  %526 = vmatpush3.bf16.msra.mxu1 %v545_v3  ;;  %493 = vmatpush3.bf16.msra.mxu0 %v545_v3  ;;  %s194_s17 = scalar_lea.vmem %s667_s2, %s462_s12 }
  0x10   : > { %519 = vmatprep.subr.bf16.mxu1 %v562_v1  ;;  %494 = vmatprep.subr.bf16.mxu0 %v562_v1  ;;  %v551_v9 = vld [vmem:[%s617_s27 + $0x8] sm:$0xff]   ;;  %v552_v10 = vld [vmem:[%s617_s27] sm:$0xff]   ;;  %v553_v11 = vld [vmem:[%s617_s27 + $0x10] sm:$0xff]  }
  0x13   : > { %527 = vmatpush3.bf16.msra.mxu1 %v546_v4  ;;  %495 = vmatpush3.bf16.msra.mxu0 %v546_v4 }
  0x14   : > { %520 = vmatprep.subr.bf16.mxu1 %v562_v1  ;;  %496 = vmatprep.subr.bf16.mxu0 %v562_v1 }
  0x17   : > { %528 = vmatpush3.bf16.msra.mxu1 %v547_v5  ;;  %497 = vmatpush3.bf16.msra.mxu0 %v547_v5 }
  0x18   : > { %521 = vmatprep.subr.bf16.mxu1 %v562_v1  ;;  %498 = vmatprep.subr.bf16.mxu0 %v562_v1 }
  0x1b   : > { %529 = vmatpush3.bf16.msra.mxu1 %v548_v6  ;;  %499 = vmatpush3.bf16.msra.mxu0 %v548_v6 }
  0x1c   : > { %522 = vmatprep.subr.bf16.mxu1 %v562_v1  ;;  %500 = vmatprep.subr.bf16.mxu0 %v562_v1 }
  0x1f   : > { %530 = vmatpush3.bf16.msra.mxu1 %v549_v7  ;;  %501 = vmatpush3.bf16.msra.mxu0 %v549_v7 }
  0x20   : > { %523 = vmatprep.subr.bf16.mxu1 %v562_v1  ;;  %502 = vmatprep.subr.bf16.mxu0 %v562_v1 }
  0x23   : > { %531 = vmatpush3.bf16.msra.mxu1 %v550_v8  ;;  %503 = vmatpush3.bf16.msra.mxu0 %v550_v8 }
  0x26   : > { %509 = vmatmul.mubr.bf16.vlgmr.msra.gmra.mrb[0].mxu1 %v551_v9  ;;  %505 = vmatmul.mubr.bf16.vlgmr.msra.gmra.mrb[0].mxu0 %v552_v10 }
  0x27   : > { %512 = vmatprep.mubr.msk.bf16.mxu1 %vm563_vm0, %v562_v1 }
  0x2e   : > { %513 = vmatmul.mubr.bf16.gmra.mrb[4].mxu1 %v553_v11 }
  0xf9   : > { %v327_v12 = vpop.f32.mrb[0].mxu1  ;;  %v319_v13 = vpop.f32.mrb[0].mxu0 }
  0xfa   : > { %344 = vst [vmem:[%s194_s17 + $0x10] sm:$0xff] %v327_v12  ;;  %v510_v14 = vpop.f32.mrb[1].mxu1  ;;  %342 = vst [vmem:[%s194_s17] sm:$0xff] %v319_v13  ;;  %v506_v15 = vpop.f32.mrb[1].mxu0 }
  0xfb   : > { %v330_v16 = vpop.f32.mrb[2].mxu1  ;;  %v322_v17 = vpop.f32.mrb[2].mxu0 }
  0xfc   : > { %345 = vst [vmem:[%s194_s17 + $0x18] sm:$0xff] %v330_v16  ;;  %v511_v18 = vpop.f32.mrb[3].mxu1  ;;  %343 = vst [vmem:[%s194_s17 + $0x8] sm:$0xff] %v322_v17  ;;  %v507_v19 = vpop.f32.mrb[3].mxu0 }
  0xfe   : > { %351 = sbr.rel (%p474_p4) target bundleno = 261 (0x105), region = 32 }
 0x101   : > { %v335_v20 = vpop.f32.mrb[4].mxu1 }
 0x102   : > { %346 = vst [vmem:[%s194_s17 + $0x20] sm:$0xff] %v335_v20  ;;  %v514_v21 = vpop.f32.mrb[5].mxu1 }
 0x103   : > { %v338_v22 = vpop.f32.mrb[6].mxu1 }
 0x104   : > { %347 = vst [vmem:[%s194_s17 + $0x28] sm:$0xff] %v338_v22  ;;  %v515_v23 = vpop.f32.mrb[7].mxu1 }
 0x105 PF: > { %v355_v25 = vadd.f32 %v322_v17, %v319_v13  ;;  %v369_v26 = vmul.f32 %v319_v13, %v319_v13  ;;  %v370_v27 = vmul.f32 %v322_v17, %v322_v17  ;;  %v371_v28 = vmul.f32 %v327_v12, %v327_v12  ;;  %v354_v50 = vld [vmem:[%s668_s3] sm:$0x1] }
 0x106   : > { %v372_v30 = vmul.f32 %v330_v16, %v330_v16  ;;  %v373_v33 = vmul.f32 %v335_v20, %v335_v20  ;;  %v374_v36 = vmul.f32 %v338_v22, %v338_v22  ;;  %v368_v53 = vld [vmem:[%s669_s4] sm:$0x1] }
 0x107   : > { %v356_v29 = vadd.f32 %v355_v25, %v327_v12  ;;  %v375_v31 = vadd.f32 %v370_v27, %v369_v26 }
 0x109   : > { %v357_v32 = vadd.f32 %v356_v29, %v330_v16  ;;  %v376_v34 = vadd.f32 %v375_v31, %v371_v28 }
 0x10b   : > { %v358_v35 = vadd.f32 %v357_v32, %v335_v20  ;;  %v377_v37 = vadd.f32 %v376_v34, %v372_v30 }
 0x10d   : > { %v359_v38 = vadd.f32 %v358_v35, %v338_v22  ;;  %v378_v39 = vadd.f32 %v377_v37, %v373_v33 }
 0x10f   : > { %v360_v40 = vrot.slane %v359_v38, 4  ;;  %v379_v41 = vadd.f32 %v378_v39, %v374_v36 }
 0x111   : > { %v361_v42 = vadd.f32 %v360_v40, %v359_v38  ;;  %v380_v43 = vrot.slane %v379_v41, 4 }
 0x113   : > { %v362_v44 = vrot.slane %v361_v42, 2  ;;  %v381_v45 = vadd.f32 %v380_v43, %v379_v41 }
 0x115   : > { %v363_v46 = vadd.f32 %v362_v44, %v361_v42  ;;  %v382_v47 = vrot.slane %v381_v45, 2 }
 0x117   : > { %v364_v48 = vrot.slane %v363_v46, 1  ;;  %v383_v49 = vadd.f32 %v382_v47, %v381_v45 }
 0x119   : > { %v365_v51 = vadd.f32 %v364_v48, %v363_v46  ;;  %v384_v52 = vrot.slane %v383_v49, 1 }
 0x11b   : > { %v366_v54 = vadd.f32 %v365_v51, %v354_v50  ;;  %v385_v55 = vadd.f32 %v384_v52, %v383_v49 }
 0x11d   : > { %367 = vst [vmem:[%s668_s3] sm:$0x1] %v366_v54  ;;  %v386_v56 = vadd.f32 %v385_v55, %v368_v53 }
 0x11f   : > { %387 = vst [vmem:[%s669_s4] sm:$0x1] %v386_v56 }
 0x120 PF: > { %s15_s15 = sadd.s32 1, %s560_s15  }
 0x121   : > { %p12_p5 = scmp.ge.s32.totalorder %s15_s15, 5  }
 0x123   :  { %14 = sbr.rel (!%p12_p5) target bundleno = 1 (0x1), region = 78 }

// kernel: basic_block_forward.7
= control target key start
LH: loop header
LB: loop body
LE: loop exit
PB: predicated region body
PF: predicated region fallthrough
CT: control target
= control target key end

     0   :  { %s644_s13 = smov 0   ;;  %s701_s0 = inlined_call_operand.vmem [shape: f32[144,128], index: 0, kind: input, shape index: {}]   ;;  %s702_s1 = inlined_call_operand.vmem [shape: f32[144,128], index: 1, kind: input, shape index: {}]   ;;  %s703_s2 = inlined_call_operand.vmem [shape: f32[1,128], index: 2, kind: input, shape index: {}]   ;;  %s704_s3 = inlined_call_operand.vmem [shape: f32[1,128], index: 3, kind: input, shape index: {}]   ;;  %s705_s4 = inlined_call_operand.vmem [shape: f32[1,128], index: 4, kind: input, shape index: {}]   ;;  %s706_s5 = inlined_call_operand.vmem [shape: f32[1,128], index: 5, kind: input, shape index: {}]   ;;  %s707_s6 = inlined_call_operand.vmem [shape: f32[1,128], index: 6, kind: input, shape index: {}]   ;;  %s708_s7 = inlined_call_operand.vmem [shape: f32[1,128], index: 7, kind: input, shape index: {}]   ;;  %s709_s8 = inlined_call_operand.vmem [shape: f32[1,128], index: 8, kind: input, shape index: {}]   ;;  %s710_s9 = inlined_call_operand.vmem [shape: f32[1,128], index: 9, kind: input, shape index: {}]   ;;  %s711_s10 = inlined_call_operand.vmem [shape: f32[144,128], index: 10, kind: output, shape index: {}]  }
   0x1 LB: > { %s559_s14 = sadd.s32 4294967295, %s587_s13   ;;  %p563_p0 = scmp.ge.s32.totalorder %s587_s13, 1  ;;  %s587_s13 = sphi %s644_s13, %s20_s13  }
   0x2   : > { %p324_p1 = scmp.lt.s32.totalorder %s587_s13, 4 }
   0x4   : > { %p325_p2 = pnand %p563_p0, %p324_p1 }
   0x5   : > { %v391_v0 = vld [vmem:[%s703_s2] sm:$0x1] (!%p325_p2)  ;;  %s367_s23 = smul.u32 (!%p325_p2), 6, %s559_s14  ;;  %v404_v16 = vlaneseq (!%p325_p2) }
   0x6   : > { %328 = sbr.rel (%p325_p2) target bundleno = 46 (0x2e), region = 60  ;;  %v392_v1 = vld [vmem:[%s704_s3] sm:$0x1] (!%p325_p2)  ;;  %v395_v2 = vmul.f32 (!%p325_p2), 0.0078125, %v391_v0 }
   0x7   : > { %v396_v3 = vmul.f32 (!%p325_p2), 0.0078125, %v392_v1  ;;  %v435_v4 = vld [vmem:[%s705_s4] sm:$0x1] (!%p325_p2)  ;;  %p368_p3 = scmp.lt.s32.totalorder (!%p325_p2), %s367_s23, 17  ;;  %v405_v17 = vshrl.u32 (!%p325_p2), %v404_v16, 7 }
   0x8   : > { %v436_v5 = vld [vmem:[%s706_s5] sm:$0x1] (!%p325_p2)  ;;  %v397_v6 = vmul.f32 (!%p325_p2), %v395_v2, %v395_v2  ;;  %v439_v7 = vmul.f32 (!%p325_p2), 0.0078125, %v435_v4 }
   0x9   : > { %v440_v8 = vmul.f32 (!%p325_p2), 0.0078125, %v436_v5  ;;  %v393_v18 = vld [vmem:[%s707_s6] sm:$0x1] (!%p325_p2)  ;;  %v406_v19 = vsub.s32 (!%p325_p2), 0, %v405_v17 }
   0xa   : > { %v398_v9 = vsub.f32 (!%p325_p2), %v396_v3, %v397_v6  ;;  %v441_v10 = vmul.f32 (!%p325_p2), %v439_v7, %v439_v7  ;;  %v437_v21 = vld [vmem:[%s709_s8] sm:$0x1] (!%p325_p2) }
   0xb   : > { %v394_v22 = vld [vmem:[%s708_s7] sm:$0x1] (!%p325_p2) }
   0xc   : > { %v399_v11 = vmax.f32 (!%p325_p2), %v398_v9, 0.0  ;;  %v442_v12 = vsub.f32 (!%p325_p2), %v440_v8, %v441_v10  ;;  %v438_v26 = vld [vmem:[%s710_s9] sm:$0x1] (!%p325_p2) }
   0xd   : > { %s713_s23 = smov (!%p368_p3, %s367_s23), 17 }
   0xe   : > { %v400_v13 = vadd.f32 1e-05, %v399_v11  ;;  %v443_v14 = vmax.f32 %v442_v12, 0.0  ;;  %s664_s24 = sshll.u32 %s713_s23, 3 }
   0xf   : > { %s371_s29 = scalar_lea.vmem %s701_s0, %s664_s24  ;;  %s680_s15 = scalar_lea.vmem %s702_s1, %s664_s24 }
  0x10   : > { %577 = vrsqrt.f32 %v400_v13  ;;  %v444_v15 = vadd.f32 1e-05, %v443_v14  ;;  %v385_v25 = vld [vmem:[%s371_s29] sm:$0xff]  ;;  %v386_v27 = vld [vmem:[%s371_s29 + $0x8] sm:$0xff]  ;;  %v387_v31 = vld [vmem:[%s371_s29 + $0x10] sm:$0xff]  ;;  %s383_s22 = scalar_lea.vmem %s711_s10, %s664_s24 }
  0x11   : > { %v388_v32 = vld [vmem:[%s371_s29 + $0x18] sm:$0xff]  ;;  %v389_v33 = vld [vmem:[%s371_s29 + $0x20] sm:$0xff]  ;;  %v430_v35 = vld [vmem:[%s680_s15 + $0x8] sm:$0xff] }
  0x12   : > { %579 = vrsqrt.f32 %v444_v15  ;;  %v429_v34 = vld [vmem:[%s680_s15] sm:$0xff]  ;;  %v431_v36 = vld [vmem:[%s680_s15 + $0x10] sm:$0xff]  ;;  %v432_v41 = vld [vmem:[%s680_s15 + $0x18] sm:$0xff] }
  0x13   : > { %v433_v42 = vld [vmem:[%s680_s15 + $0x20] sm:$0xff]  ;;  %v390_v43 = vld [vmem:[%s371_s29 + $0x28] sm:$0xff] }
  0x14   : > { %v434_v52 = vld [vmem:[%s680_s15 + $0x28] sm:$0xff] }
  0x1a   : > { %v578_v20 = vpop.eup %577 }
  0x1b   : > { %v402_v23 = vmul.f32 %v578_v20, %v393_v18 }
  0x1c   : > { %v580_v24 = vpop.eup %579 }
  0x1d   : > { %v407_v28 = vrot.slane %v402_v23, %v406_v19  ;;  %v415_v29 = vmul.f32 %v402_v23, %v395_v2  ;;  %v446_v30 = vmul.f32 %v580_v24, %v437_v21 }
  0x1f   : > { %v409_v37 = vmul.f32 %v407_v28, %v385_v25  ;;  %v416_v38 = vsub.f32 %v394_v22, %v415_v29  ;;  %v451_v39 = vrot.slane %v446_v30, %v406_v19  ;;  %v459_v40 = vmul.f32 %v446_v30, %v439_v7 }
  0x20   : > { %v410_v44 = vmul.f32 %v407_v28, %v386_v27  ;;  %v411_v45 = vmul.f32 %v407_v28, %v387_v31  ;;  %v412_v46 = vmul.f32 %v407_v28, %v388_v32  ;;  %v413_v47 = vmul.f32 %v407_v28, %v389_v33 }
  0x21   : > { %v421_v48 = vrot.slane %v416_v38, %v406_v19  ;;  %v453_v49 = vmul.f32 %v451_v39, %v429_v34  ;;  %v460_v50 = vsub.f32 %v438_v26, %v459_v40  ;;  %v454_v51 = vmul.f32 %v451_v39, %v430_v35 }
  0x22   : > { %v455_v53 = vmul.f32 %v451_v39, %v431_v36  ;;  %v456_v54 = vmul.f32 %v451_v39, %v432_v41  ;;  %v457_v55 = vmul.f32 %v451_v39, %v433_v42  ;;  %v414_v56 = vmul.f32 %v407_v28, %v390_v43 }
  0x23   : > { %v423_v57 = vadd.f32 %v421_v48, %v409_v37  ;;  %v465_v58 = vrot.slane %v460_v50, %v406_v19  ;;  %v424_v59 = vadd.f32 %v421_v48, %v410_v44  ;;  %v425_v60 = vadd.f32 %v421_v48, %v411_v45 }
  0x24   : > { %v426_v61 = vadd.f32 %v421_v48, %v412_v46  ;;  %v427_v62 = vadd.f32 %v421_v48, %v413_v47  ;;  %v428_v63 = vadd.f32 %v421_v48, %v414_v56  ;;  %v458_v0 = vmul.f32 %v451_v39, %v434_v52 }
  0x25   : > { %v467_v1 = vadd.f32 %v465_v58, %v453_v49  ;;  %v468_v2 = vadd.f32 %v465_v58, %v454_v51  ;;  %v469_v3 = vadd.f32 %v465_v58, %v455_v53  ;;  %v470_v4 = vadd.f32 %v465_v58, %v456_v54 }
  0x26   : > { %v471_v5 = vadd.f32 %v465_v58, %v457_v55  ;;  %v472_v6 = vadd.f32 %v465_v58, %v458_v0 }
  0x27   : > { %v473_v7 = vadd.f32 %v467_v1, %v423_v57  ;;  %v474_v8 = vadd.f32 %v468_v2, %v424_v59  ;;  %v475_v9 = vadd.f32 %v469_v3, %v425_v60  ;;  %v476_v10 = vadd.f32 %v470_v4, %v426_v61 }
  0x28   : > { %v477_v11 = vadd.f32 %v471_v5, %v427_v62  ;;  %v478_v12 = vadd.f32 %v472_v6, %v428_v63 }
  0x29   : > { %v479_v13 = vmax.f32 %v473_v7, 0.0  ;;  %v480_v14 = vmax.f32 %v474_v8, 0.0  ;;  %v481_v15 = vmax.f32 %v475_v9, 0.0  ;;  %v482_v16 = vmax.f32 %v476_v10, 0.0 }
  0x2a   : > { %v483_v17 = vmax.f32 %v477_v11, 0.0  ;;  %v484_v18 = vmax.f32 %v478_v12, 0.0 }
  0x2b   : > { %485 = vst [vmem:[%s383_s22] sm:$0xff] %v479_v13  ;;  %486 = vst [vmem:[%s383_s22 + $0x8] sm:$0xff] %v480_v14 }
  0x2c   : > { %487 = vst [vmem:[%s383_s22 + $0x10] sm:$0xff] %v481_v15  ;;  %488 = vst [vmem:[%s383_s22 + $0x18] sm:$0xff] %v482_v16 }
  0x2d   : > { %489 = vst [vmem:[%s383_s22 + $0x20] sm:$0xff] %v483_v17  ;;  %490 = vst [vmem:[%s383_s22 + $0x28] sm:$0xff] %v484_v18 }
  0x2e PF: > { %s20_s13 = sadd.s32 1, %s587_s13  }
  0x2f   : > { %p17_p4 = scmp.ge.s32.totalorder %s20_s13, 5  }
  0x31   :  { %19 = sbr.rel (!%p17_p4) target bundleno = 1 (0x1), region = 93 }

// kernel: basic_block_forward.6
= control target key start
LH: loop header
LB: loop body
LE: loop exit
PB: predicated region body
PF: predicated region fallthrough
CT: control target
= control target key end

     0   :  { %s1071_s30 = smov 0   ;;  %s1240_s0 = inlined_call_operand.vmem [shape: bf16[144,128], index: 0, kind: input, shape index: {}]   ;;  %s1241_s1 = inlined_call_operand.vmem [shape: bf16[128,128], index: 1, kind: input, shape index: {}]   ;;  %s1242_s2 = inlined_call_operand.vmem [shape: bf16[144,128], index: 2, kind: input, shape index: {}]   ;;  %s1243_s3 = inlined_call_operand.vmem [shape: bf16[128,128], index: 3, kind: input, shape index: {}]   ;;  %s1244_s4 = inlined_call_operand.vmem [shape: f32[144,128], index: 4, kind: output, shape index: {0}]   ;;  %s1245_s5 = inlined_call_operand.vmem [shape: f32[144,128], index: 5, kind: output, shape index: {1}]   ;;  %s1246_s6 = inlined_call_operand.vmem [shape: f32[1,128], index: 6, kind: output, shape index: {2}]   ;;  %s1247_s7 = inlined_call_operand.vmem [shape: f32[1,128], index: 7, kind: output, shape index: {3}]   ;;  %s1248_s8 = inlined_call_operand.vmem [shape: f32[1,128], index: 8, kind: output, shape index: {4}]   ;;  %s1249_s9 = inlined_call_operand.vmem [shape: f32[1,128], index: 9, kind: output, shape index: {5}]  }
   0x1 LB: > { %s865_s10 = sadd.s32 4294967295, %s1016_s30   ;;  %p869_p0 = scmp.ge.s32.totalorder %s1016_s30, 1  ;;  %s1016_s30 = sphi %s1071_s30, %s20_s30  }
   0x2   : > { %p290_p1 = scmp.lt.s32.totalorder %s1016_s30, 4 }
   0x4   : > { %p291_p2 = pnand %p869_p0, %p290_p1 }
   0x5   : > { %v988_v0 = vld [vmem:[%s1241_s1] sm:$0xff] (!%p291_p2)   ;;  %v1018_v1 = vmov (!%p291_p2), 0.0   ;;  %v990_v3 = vld [vmem:[%s1241_s1 + $0x8] sm:$0xff] (!%p291_p2)   ;;  %vm1019_vm0 = vmmov (!%p291_p2), 0   ;;  %s336_s17 = smul.u32 (!%p291_p2), 6, %s865_s10  ;;  %v992_v5 = vld [vmem:[%s1241_s1 + $0x10] sm:$0xff] (!%p291_p2)  }
   0x6   : > { %294 = sbr.rel (%p291_p2) target bundleno = 298 (0x12a), region = 36  ;;  %921 = vmatprep.subr.bf16.mxu0 (!%p291_p2), %v1018_v1  ;;  %949 = vmatprep.subr.bf16.mxu1 (!%p291_p2), %v1018_v1  ;;  %v989_v2 = vld [vmem:[%s1243_s3] sm:$0xff] (!%p291_p2)   ;;  %v991_v4 = vld [vmem:[%s1243_s3 + $0x8] sm:$0xff] (!%p291_p2)   ;;  %v993_v6 = vld [vmem:[%s1243_s3 + $0x10] sm:$0xff] (!%p291_p2)   ;;  %p896_p4 = scmp.ne.s32.totalorder (!%p291_p2), %s865_s10, 0 }
   0x7   : > { %922 = vmatpush3.bf16.msra.mxu0 (!%p291_p2), %v988_v0  ;;  %937 = vmatprep.mubr.msk.bf16.mxu0 (!%p291_p2), %vm1019_vm0, %v1018_v1  ;;  %p337_p3 = scmp.lt.s32.totalorder (!%p291_p2), %s336_s17, 17  ;;  %v994_v7 = vld [vmem:[%s1241_s1 + $0x18] sm:$0xff] (!%p291_p2)   ;;  %v996_v9 = vld [vmem:[%s1241_s1 + $0x20] sm:$0xff] (!%p291_p2)   ;;  %v998_v11 = vld [vmem:[%s1241_s1 + $0x28] sm:$0xff] (!%p291_p2)  }
   0x8   : > { %950 = vmatpush3.bf16.msra.mxu1 (!%p291_p2), %v989_v2  ;;  %923 = vmatprep.subr.bf16.mxu0 (!%p291_p2), %v1018_v1  ;;  %v995_v8 = vld [vmem:[%s1243_s3 + $0x18] sm:$0xff] (!%p291_p2)   ;;  %v997_v10 = vld [vmem:[%s1243_s3 + $0x20] sm:$0xff] (!%p291_p2)   ;;  %v999_v12 = vld [vmem:[%s1243_s3 + $0x28] sm:$0xff] (!%p291_p2)  }
   0x9   : > { %951 = vmatprep.subr.bf16.mxu1 (!%p291_p2), %v1018_v1  ;;  %965 = vmatprep.mubr.msk.bf16.mxu1 (!%p291_p2), %vm1019_vm0, %v1018_v1  ;;  %v1000_v13 = vld [vmem:[%s1241_s1 + $0x30] sm:$0xff] (!%p291_p2)   ;;  %v1002_v15 = vld [vmem:[%s1241_s1 + $0x38] sm:$0xff] (!%p291_p2)  }
   0xa   : > { %v1001_v14 = vld [vmem:[%s1243_s3 + $0x30] sm:$0xff] (!%p291_p2)   ;;  %v1003_v16 = vld [vmem:[%s1243_s3 + $0x38] sm:$0xff] (!%p291_p2)  }
   0xb   : > { %924 = vmatpush3.bf16.msra.mxu0 (!%p291_p2), %v990_v3 }
   0xc   : > { %952 = vmatpush3.bf16.msra.mxu1 (!%p291_p2), %v991_v4  ;;  %925 = vmatprep.subr.bf16.mxu0 (!%p291_p2), %v1018_v1 }
   0xd   : > { %953 = vmatprep.subr.bf16.mxu1 %v1018_v1  ;;  %s1251_s17 = smov (!%p337_p3, %s336_s17), 17  ;;  %v1020_v47 = vmov (!%p896_p4), 0.0  }
   0xe   : > { %s870_s28 = sshll.u32 %s1251_s17, 2  ;;  %s872_s14 = sshll.u32 %s1251_s17, 3  ;;  %667 = vst [vmem:[%s1246_s6] sm:$0x1] (!%p896_p4), %v1020_v47  ;;  %668 = vst [vmem:[%s1247_s7] sm:$0x1] (!%p896_p4), %v1020_v47 }
   0xf   : > { %926 = vmatpush3.bf16.msra.mxu0 %v992_v5  ;;  %s1130_s16 = scalar_lea.vmem %s1240_s0, %s870_s28  ;;  %s1136_s20 = scalar_lea.vmem %s1242_s2, %s870_s28  ;;  %669 = vst [vmem:[%s1248_s8] sm:$0x1] (!%p896_p4), %v1020_v47  ;;  %670 = vst [vmem:[%s1249_s9] sm:$0x1] (!%p896_p4), %v1020_v47 }
  0x10   : > { %954 = vmatpush3.bf16.msra.mxu1 %v993_v6  ;;  %927 = vmatprep.subr.bf16.mxu0 %v1018_v1  ;;  %v1004_v17 = vld [vmem:[%s1130_s16] sm:$0xff]   ;;  %v1006_v19 = vld [vmem:[%s1130_s16 + $0x8] sm:$0xff]   ;;  %v1008_v21 = vld [vmem:[%s1130_s16 + $0x10] sm:$0xff]   ;;  %s1180_s19 = scalar_lea.vmem %s1244_s4, %s872_s14  ;;  %s1185_s23 = scalar_lea.vmem %s1245_s5, %s872_s14 }
  0x11   : > { %955 = vmatprep.subr.bf16.mxu1 %v1018_v1  ;;  %v1005_v18 = vld [vmem:[%s1136_s20] sm:$0xff]   ;;  %v1007_v20 = vld [vmem:[%s1136_s20 + $0x8] sm:$0xff]   ;;  %v1009_v22 = vld [vmem:[%s1136_s20 + $0x10] sm:$0xff]  }
  0x13   : > { %928 = vmatpush3.bf16.msra.mxu0 %v994_v7 }
  0x14   : > { %956 = vmatpush3.bf16.msra.mxu1 %v995_v8  ;;  %929 = vmatprep.subr.bf16.mxu0 %v1018_v1 }
  0x15   : > { %957 = vmatprep.subr.bf16.mxu1 %v1018_v1 }
  0x17   : > { %930 = vmatpush3.bf16.msra.mxu0 %v996_v9 }
  0x18   : > { %958 = vmatpush3.bf16.msra.mxu1 %v997_v10  ;;  %931 = vmatprep.subr.bf16.mxu0 %v1018_v1 }
  0x19   : > { %959 = vmatprep.subr.bf16.mxu1 %v1018_v1 }
  0x1b   : > { %932 = vmatpush3.bf16.msra.mxu0 %v998_v11 }
  0x1c   : > { %960 = vmatpush3.bf16.msra.mxu1 %v999_v12  ;;  %933 = vmatprep.subr.bf16.mxu0 %v1018_v1 }
  0x1d   : > { %961 = vmatprep.subr.bf16.mxu1 %v1018_v1 }
  0x1f   : > { %934 = vmatpush3.bf16.msra.mxu0 %v1000_v13 }
  0x20   : > { %962 = vmatpush3.bf16.msra.mxu1 %v1001_v14  ;;  %935 = vmatprep.subr.bf16.mxu0 %v1018_v1 }
  0x21   : > { %963 = vmatprep.subr.bf16.mxu1 %v1018_v1 }
  0x23   : > { %936 = vmatpush3.bf16.msra.mxu0 %v1002_v15 }
  0x24   : > { %964 = vmatpush3.bf16.msra.mxu1 %v1003_v16 }
  0x26   : > { %938 = vmatmul.mubr.bf16.vlgmr.msra.gmra.mrb[0].mxu0 %v1004_v17 }
  0x27   : > { %966 = vmatmul.mubr.bf16.vlgmr.msra.gmra.mrb[0].mxu1 %v1005_v18  ;;  %941 = vmatprep.mubr.msk.bf16.mxu0 %vm1019_vm0, %v1018_v1 }
  0x28   : > { %969 = vmatprep.mubr.msk.bf16.mxu1 %vm1019_vm0, %v1018_v1 }
  0x2e   : > { %942 = vmatmul.mubr.bf16.gmra.mrb[4].mxu0 %v1006_v19 }
  0x2f   : > { %970 = vmatmul.mubr.bf16.gmra.mrb[4].mxu1 %v1007_v20  ;;  %945 = vmatprep.mubr.msk.bf16.mxu0 %vm1019_vm0, %v1018_v1 }
  0x30   : > { %973 = vmatprep.mubr.msk.bf16.mxu1 %vm1019_vm0, %v1018_v1 }
  0x36   : > { %946 = vmatmul.mubr.bf16.gmra.mrb[8].mxu0 %v1008_v21 }
  0x37   : > { %974 = vmatmul.mubr.bf16.gmra.mrb[8].mxu1 %v1009_v22 }
  0xf9   : > { %v483_v23 = vpop.f32.mrb[0].mxu0 }
  0xfa   : > { %651 = vst [vmem:[%s1180_s19] sm:$0xff] %v483_v23  ;;  %v628_v24 = vpop.f32.mrb[0].mxu1  ;;  %v939_v25 = vpop.f32.mrb[1].mxu0 }
  0xfb   : > { %657 = vst [vmem:[%s1185_s23] sm:$0xff] %v628_v24  ;;  %v967_v26 = vpop.f32.mrb[1].mxu1  ;;  %v486_v27 = vpop.f32.mrb[2].mxu0 }
  0xfc   : > { %652 = vst [vmem:[%s1180_s19 + $0x8] sm:$0xff] %v486_v27  ;;  %v631_v28 = vpop.f32.mrb[2].mxu1  ;;  %v940_v29 = vpop.f32.mrb[3].mxu0 }
  0xfd   : > { %658 = vst [vmem:[%s1185_s23 + $0x8] sm:$0xff] %v631_v28  ;;  %v968_v30 = vpop.f32.mrb[3].mxu1 }
 0x101   : > { %v491_v31 = vpop.f32.mrb[4].mxu0 }
 0x102   : > { %653 = vst [vmem:[%s1180_s19 + $0x10] sm:$0xff] %v491_v31  ;;  %v636_v32 = vpop.f32.mrb[4].mxu1  ;;  %v943_v33 = vpop.f32.mrb[5].mxu0 }
 0x103   : > { %659 = vst [vmem:[%s1185_s23 + $0x10] sm:$0xff] %v636_v32  ;;  %v971_v34 = vpop.f32.mrb[5].mxu1  ;;  %v494_v35 = vpop.f32.mrb[6].mxu0 }
 0x104   : > { %654 = vst [vmem:[%s1180_s19 + $0x18] sm:$0xff] %v494_v35  ;;  %v639_v36 = vpop.f32.mrb[6].mxu1  ;;  %v944_v37 = vpop.f32.mrb[7].mxu0 }
 0x105   : > { %660 = vst [vmem:[%s1185_s23 + $0x18] sm:$0xff] %v639_v36  ;;  %v972_v38 = vpop.f32.mrb[7].mxu1 }
 0x107   : > { %666 = sbr.rel (%p896_p4) target bundleno = 270 (0x10e), region = 40 }
 0x109   : > { %v499_v39 = vpop.f32.mrb[8].mxu0 }
 0x10a   : > { %655 = vst [vmem:[%s1180_s19 + $0x20] sm:$0xff] %v499_v39  ;;  %v644_v40 = vpop.f32.mrb[8].mxu1  ;;  %v947_v41 = vpop.f32.mrb[9].mxu0 }
 0x10b   : > { %661 = vst [vmem:[%s1185_s23 + $0x20] sm:$0xff] %v644_v40  ;;  %v975_v42 = vpop.f32.mrb[9].mxu1  ;;  %v502_v43 = vpop.f32.mrb[10].mxu0 }
 0x10c   : > { %656 = vst [vmem:[%s1180_s19 + $0x28] sm:$0xff] %v502_v43  ;;  %v647_v44 = vpop.f32.mrb[10].mxu1  ;;  %v948_v45 = vpop.f32.mrb[11].mxu0 }
 0x10d   : > { %662 = vst [vmem:[%s1185_s23 + $0x28] sm:$0xff] %v647_v44  ;;  %v976_v46 = vpop.f32.mrb[11].mxu1 }
 0x10e PF: > { %v672_v48 = vadd.f32 %v486_v27, %v483_v23  ;;  %v686_v49 = vmul.f32 %v483_v23, %v483_v23  ;;  %v687_v50 = vmul.f32 %v486_v27, %v486_v27  ;;  %v688_v51 = vmul.f32 %v491_v31, %v491_v31  ;;  %v685_v38 = vld [vmem:[%s1247_s7] sm:$0x1] }
 0x10f   : > { %v689_v52 = vmul.f32 %v494_v35, %v494_v35  ;;  %v706_v53 = vadd.f32 %v631_v28, %v628_v24  ;;  %v720_v56 = vmul.f32 %v628_v24, %v628_v24  ;;  %v721_v57 = vmul.f32 %v631_v28, %v631_v28 }
 0x110   : > { %v673_v54 = vadd.f32 %v672_v48, %v491_v31  ;;  %v692_v55 = vadd.f32 %v687_v50, %v686_v49  ;;  %v690_v58 = vmul.f32 %v499_v39, %v499_v39  ;;  %v722_v60 = vmul.f32 %v636_v32, %v636_v32 }
 0x111   : > { %v707_v59 = vadd.f32 %v706_v53, %v636_v32  ;;  %v723_v63 = vmul.f32 %v639_v36, %v639_v36  ;;  %v726_v0 = vadd.f32 %v721_v57, %v720_v56  ;;  %v691_v1 = vmul.f32 %v502_v43, %v502_v43  ;;  %v671_v32 = vld [vmem:[%s1246_s6] sm:$0x1] }
 0x112   : > { %v674_v61 = vadd.f32 %v673_v54, %v494_v35  ;;  %v693_v62 = vadd.f32 %v692_v55, %v688_v51  ;;  %v724_v5 = vmul.f32 %v644_v40, %v644_v40  ;;  %v725_v10 = vmul.f32 %v647_v44, %v647_v44 }
 0x113   : > { %v708_v2 = vadd.f32 %v707_v59, %v639_v36  ;;  %v727_v6 = vadd.f32 %v726_v0, %v722_v60  ;;  %v705_v36 = vld [vmem:[%s1248_s8] sm:$0x1] }
 0x114   : > { %v675_v3 = vadd.f32 %v674_v61, %v499_v39  ;;  %v694_v4 = vadd.f32 %v693_v62, %v689_v52 }
 0x115   : > { %v709_v7 = vadd.f32 %v708_v2, %v644_v40  ;;  %v728_v11 = vadd.f32 %v727_v6, %v723_v63 }
 0x116   : > { %v676_v8 = vadd.f32 %v675_v3, %v502_v43  ;;  %v695_v9 = vadd.f32 %v694_v4, %v690_v58 }
 0x117   : > { %v710_v12 = vadd.f32 %v709_v7, %v647_v44  ;;  %v729_v15 = vadd.f32 %v728_v11, %v724_v5  ;;  %v719_v44 = vld [vmem:[%s1249_s9] sm:$0x1] }
 0x118   : > { %v677_v13 = vrot.slane %v676_v8, 4  ;;  %v696_v14 = vadd.f32 %v695_v9, %v691_v1 }
 0x119   : > { %v711_v16 = vrot.slane %v710_v12, 4  ;;  %v730_v19 = vadd.f32 %v729_v15, %v725_v10 }
 0x11a   : > { %v678_v17 = vadd.f32 %v677_v13, %v676_v8  ;;  %v697_v18 = vrot.slane %v696_v14, 4 }
 0x11b   : > { %v712_v20 = vadd.f32 %v711_v16, %v710_v12  ;;  %v731_v23 = vrot.slane %v730_v19, 4 }
 0x11c   : > { %v679_v21 = vrot.slane %v678_v17, 2  ;;  %v698_v22 = vadd.f32 %v697_v18, %v696_v14 }
 0x11d   : > { %v713_v24 = vrot.slane %v712_v20, 2  ;;  %v732_v27 = vadd.f32 %v731_v23, %v730_v19 }
 0x11e   : > { %v680_v25 = vadd.f32 %v679_v21, %v678_v17  ;;  %v699_v26 = vrot.slane %v698_v22, 2 }
 0x11f   : > { %v714_v28 = vadd.f32 %v713_v24, %v712_v20  ;;  %v733_v31 = vrot.slane %v732_v27, 2 }
 0x120   : > { %v681_v29 = vrot.slane %v680_v25, 1  ;;  %v700_v30 = vadd.f32 %v699_v26, %v698_v22 }
 0x121   : > { %v715_v33 = vrot.slane %v714_v28, 1  ;;  %v734_v37 = vadd.f32 %v733_v31, %v732_v27 }
 0x122   : > { %v682_v34 = vadd.f32 %v681_v29, %v680_v25  ;;  %v701_v35 = vrot.slane %v700_v30, 1 }
 0x123   : > { %v716_v39 = vadd.f32 %v715_v33, %v714_v28  ;;  %v735_v42 = vrot.slane %v734_v37, 1 }
 0x124   : > { %v683_v40 = vadd.f32 %v682_v34, %v671_v32  ;;  %v702_v41 = vadd.f32 %v701_v35, %v700_v30 }
 0x125   : > { %v717_v43 = vadd.f32 %v716_v39, %v705_v36  ;;  %v736_v46 = vadd.f32 %v735_v42, %v734_v37 }
 0x126   : > { %684 = vst [vmem:[%s1246_s6] sm:$0x1] %v683_v40  ;;  %v703_v45 = vadd.f32 %v702_v41, %v685_v38 }
 0x127   : > { %718 = vst [vmem:[%s1248_s8] sm:$0x1] %v717_v43  ;;  %v737_v47 = vadd.f32 %v736_v46, %v719_v44 }
 0x128   : > { %704 = vst [vmem:[%s1247_s7] sm:$0x1] %v703_v45 }
 0x129   : > { %738 = vst [vmem:[%s1249_s9] sm:$0x1] %v737_v47 }
 0x12a PF: > { %s20_s30 = sadd.s32 1, %s1016_s30  }
 0x12b   : > { %p17_p5 = scmp.ge.s32.totalorder %s20_s30, 5  }
 0x12d   :  { %19 = sbr.rel (!%p17_p5) target bundleno = 1 (0x1), region = 117 }

</bundles_post_ra>
